<compile_context>
chip_gen: v6e
topology: v6e:2x2x1
jax: 0.10.0
libtpu: 0.0.40
codegen_flags: <defaults>
</compile_context>

<pallas_src>
import functools

import numpy as np
import jax
import jax.numpy as jnp
from jax.experimental import pallas as pl
from jax.experimental.pallas import tpu as pltpu


def _round_up(n, m):
    return ((n + m - 1) // m) * m


# ---------------------------------------------------------------------------
# Fused decoder kernel: whole batch, whole network, one invocation.
# Layout: "position-major, batch-minor (padded to 8 sublanes), channels-last":
#   row p*BP + b of a 2-D (rows, channels) value is batch b at padded
#   position p.
# ---------------------------------------------------------------------------
def _decoder_kernel(x_ref, p_ref, out_ref, *, layout, B, BP, k, C3, L0, L3,
                    d1, P1, P2, P3, size):
    f32 = jnp.float32

    def rd(name):                                    # static-offset slice of the
        r0, r, c = layout[name]                      # single packed param buffer
        return p_ref[r0:r0 + r, 0:c]

    # ---------------- stage 1: Linear + ReLU as ONE matmul ------------------
    x = x_ref[...]                                   # (B, C3)
    if BP > B:                                       # pad batch to 8 sublanes
        x = jnp.concatenate([x, jnp.zeros((BP - B, C3), f32)], axis=0)
    y1 = jnp.maximum(
        jnp.dot(x, rd("w1"), preferred_element_type=f32) + rd("b1"),
        0.0)                                         # (BP, L0*C3)

    # Rearrange to position-major rows with zero position-borders (implicit
    # zero padding for the transposed convs).  All pieces are 8-row groups.
    ztop = jnp.zeros((d1 * BP, C3), f32)
    zbot = jnp.zeros(((P1 - d1 - L0) * BP, C3), f32)
    x1 = jnp.concatenate(
        [ztop] + [y1[:, l * C3:(l + 1) * C3] for l in range(L0)] + [zbot],
        axis=0)                                      # (P1*BP, C3)

    # ------------- gather-form ConvTranspose1d (+ ReLU), accumulate form ----
    def convt_relu(xin, n_pos, w_taps, bias):
        n = n_pos * BP
        a = bias                                     # pre-masked: padded positions stay 0
        for j in range(k):                           # tap shift == whole-tile row shift
            a = a + jnp.dot(xin[j * BP:j * BP + n, :], w_taps[j],
                            preferred_element_type=f32)
        return jnp.maximum(a, 0.0)

    x2 = convt_relu(x1, P2, [rd(f"wt1_{j}") for j in range(k)], rd("bm2"))
    x3 = convt_relu(x2, P3, [rd(f"wt2_{j}") for j in range(k)], rd("bm3"))
    h = convt_relu(x3, L3, [rd(f"wt3_{j}") for j in range(k)], rd("b3"))  # (L3*BP,128)

    # ----------------------- final Linear(128, size) ------------------------
    y = jnp.dot(h, rd("w2"), preferred_element_type=f32) + rd("b2")       # (L3*BP,size)

    # Single lane-dense slab store: (BP, L3*size) == (8, 128) -> unmasked vst.
    out_ref[...] = jnp.concatenate(
        [y[p * BP:(p + 1) * BP, :] for p in range(L3)], axis=1)


# ---------------------------------------------------------------------------
# One-time parameter preparation + packing (hoisted out of the forward path)
# ---------------------------------------------------------------------------
def prepare_decoder_params(params, *, init_dim, num_filters, k_size, size, batch):
    k = k_size
    BP = max(8, _round_up(batch, 8))
    C3, C2, C1 = num_filters * 3, num_filters * 2, num_filters
    L0 = init_dim - 3 * (k - 1)
    L1, L2 = L0 + (k - 1), L0 + 2 * (k - 1)
    d2, d3 = 2 * (k - 1), (k - 1)
    P2, P3 = init_dim + 2 * (k - 1), init_dim + (k - 1)

    (W1, b1, Wt1, bt1, Wt2, bt2, Wt3, bt3, W2, b2) = [
        np.asarray(p, np.float32) for p in params]

    # Stage-1 Linear fused to a single (C3, L0*C3) weight whose output column
    # l*C3 + c reproduces PyTorch's h.view(-1, C3, L0)[:, c, l].
    w1cat = np.ascontiguousarray(
        W1.reshape(C3, L0, C3).transpose(1, 0, 2).reshape(L0 * C3, C3).T)
    b1cat = np.ascontiguousarray(b1.reshape(C3, L0).T.reshape(1, L0 * C3))

    def taps(Wt):        # tap-flipped (Cin, Cout) slices for gather-form convT
        return [np.ascontiguousarray(Wt[:, :, k - 1 - j]) for j in range(k)]

    def masked_bias(bias, P, d, L):   # zero bias outside the valid data window
        pos = np.arange(P)
        valid = ((pos >= d) & (pos < d + L)).astype(np.float32)
        return np.repeat(valid, BP)[:, None] * bias[None, :]

    blocks = {"w1": w1cat, "b1": b1cat}
    for j, t in enumerate(taps(Wt1)):
        blocks[f"wt1_{j}"] = t
    for j, t in enumerate(taps(Wt2)):
        blocks[f"wt2_{j}"] = t
    for j, t in enumerate(taps(Wt3)):
        blocks[f"wt3_{j}"] = t
    blocks["bm2"] = masked_bias(bt1, P2, d2, L1)
    blocks["bm3"] = masked_bias(bt2, P3, d3, L2)
    blocks["b3"] = bt3.reshape(1, -1)
    blocks["w2"] = np.ascontiguousarray(W2.T)        # (128, size)
    blocks["b2"] = b2.reshape(1, -1)

    lanes = _round_up(max(128, max(a.shape[1] for a in blocks.values())), 128)
    layout, row = {}, 0
    for name, a in blocks.items():
        layout[name] = (row, a.shape[0], a.shape[1])
        row += _round_up(a.shape[0], 8)              # 8-sublane-align every block
    buf = np.zeros((_round_up(row, 8), lanes), np.float32)
    for name, a in blocks.items():
        r0, r, c = layout[name]
        buf[r0:r0 + r, :c] = a
    return {"buf": jnp.asarray(buf), "layout": layout, "BP": BP}


# ---------------------------------------------------------------------------
# Forward wrapper: one pallas_call, 2 input DMAs + 1 output DMA, no grid.
# ---------------------------------------------------------------------------
def decoder_forward(x, prep, *, init_dim, num_filters, k_size, size):
    B = x.shape[0]
    k = k_size
    C3, C2, C1 = num_filters * 3, num_filters * 2, num_filters
    L0 = init_dim - 3 * (k - 1)
    L3 = init_dim
    d1 = 3 * (k - 1)
    P1 = init_dim + 3 * (k - 1)
    P2 = init_dim + 2 * (k - 1)
    P3 = init_dim + (k - 1)
    BP = prep["BP"]
    assert BP >= B and BP % 8 == 0

    kern = functools.partial(
        _decoder_kernel, layout=prep["layout"], B=B, BP=BP, k=k, C3=C3,
        L0=L0, L3=L3, d1=d1, P1=P1, P2=P2, P3=P3, size=size)

    flops = (2 * BP * C3 * L0 * C3
             + 2 * k * BP * (P2 * C3 * C2 + P3 * C2 * C1 + L3 * C1 * 128)
             + 2 * L3 * BP * 128 * size)
    bytes_accessed = 4 * (x.size + prep["buf"].size + BP * L3 * size)

    vmem = pl.BlockSpec(memory_space=pltpu.MemorySpace.VMEM)
    out = pl.pallas_call(
        kern,
        out_shape=jax.ShapeDtypeStruct((BP, L3 * size), jnp.float32),
        in_specs=[vmem, vmem],
        out_specs=vmem,
        cost_estimate=pl.CostEstimate(flops=flops, transcendentals=0,
                                      bytes_accessed=bytes_accessed),
    )(x, prep["buf"])
    # Cheap wrapper-side fix-up: split position/feature lanes, drop batch pad.
    return out.reshape(BP, L3, size)[:B]


# ---------------------------------------------------------------------------
# Pure-numpy reference (scatter-form transposed conv) for verification
# ---------------------------------------------------------------------------
def reference_forward(x, params, *, init_dim, num_filters, k_size, size):
    p = [np.asarray(a, np.float64) for a in params]
    W1, b1, Wt1, bt1, Wt2, bt2, Wt3, bt3, W2, b2 = p
    xn = np.asarray(x, np.float64)
    k = k_size
    C3 = num_filters * 3
    L0 = init_dim - 3 * (k - 1)

    h = np.maximum(xn @ W1.T + b1, 0.0)
    h = h.reshape(-1, C3, L0)                    # PyTorch .view semantics

    def convt_relu(z, W, b):
        B_, Cin, Lin = z.shape
        Cout = W.shape[1]
        Lout = Lin + k - 1
        y = np.zeros((B_, Cout, Lout))
        for j in range(k):
            y[:, :, j:j + Lin] += np.einsum('bcl,cd->bdl', z, W[:, :, j])
        y += b[None, :, None]
        return np.maximum(y, 0.0)

    h = convt_relu(h, Wt1, bt1)
    h = convt_relu(h, Wt2, bt2)
    h = convt_relu(h, Wt3, bt3)
    h = h.transpose(0, 2, 1)                     # permute(0, 2, 1)
    return h @ W2.T + b2


if __name__ == "__main__":
    init_dim, num_filters, k_size, size = 16, 4, 3, 8
    B = 2
    C3 = num_filters * 3
    L0 = init_dim - 3 * (k_size - 1)

    key = jax.random.PRNGKey(0)
    keys = jax.random.split(key, 11)

    def rnd(kk, shape, scale=0.1):
        return (scale * jax.random.normal(kk, shape)).astype(jnp.float32)

    params = (
        rnd(keys[0], (C3 * L0, C3)),                           # W1 (out, in)
        rnd(keys[1], (C3 * L0,)),                              # b1
        rnd(keys[2], (C3, num_filters * 2, k_size)),           # Wt1 (Cin, Cout, k)
        rnd(keys[3], (num_filters * 2,)),                      # bt1
        rnd(keys[4], (num_filters * 2, num_filters, k_size)),  # Wt2
        rnd(keys[5], (num_filters,)),                          # bt2
        rnd(keys[6], (num_filters, 128, k_size)),              # Wt3
        rnd(keys[7], (128,)),                                  # bt3
        rnd(keys[8], (size, 128)),                             # W2 (out, in)
        rnd(keys[9], (size,)),                                 # b2
    )
    x = rnd(keys[10], (B, C3), scale=1.0)

    # one-time prep + packing (hoisted out of the forward path)
    prep = prepare_decoder_params(params, init_dim=init_dim,
                                  num_filters=num_filters, k_size=k_size,
                                  size=size, batch=B)

    out = decoder_forward(x, prep, init_dim=init_dim,
                          num_filters=num_filters, k_size=k_size, size=size)
    out = jax.block_until_ready(out)

    ref = reference_forward(x, params, init_dim=init_dim,
                            num_filters=num_filters, k_size=k_size, size=size)
    assert out.shape == (B, init_dim, size)
    np.testing.assert_allclose(np.asarray(out), ref, rtol=1e-4, atol=1e-4)
    print("KERNEL_OK")
</pallas_src>

<mosaic_0001>
module attributes {stable_mosaic.version = 11 : i64} {
  func.func @_decoder_kernel(%arg0: memref<2x12xf32, #tpu.memory_space<vmem>>, %arg1: memref<568x128xf32, #tpu.memory_space<vmem>>, %arg2: memref<8x128xf32, #tpu.memory_space<vmem>>) attributes {dimension_semantics = [], scalar_prefetch = 0 : i64, scratch_operands = 0 : i64, tpu.core_type = #tpu.core_type<tc>} {
    %c0 = arith.constant 0 : index
    %c0_0 = arith.constant 0 : index
    %0 = vector.load %arg0[%c0, %c0_0] : memref<2x12xf32, #tpu.memory_space<vmem>>, vector<2x12xf32>
    %cst = arith.constant 0.000000e+00 : f32
    %1 = vector.broadcast %cst : f32 to vector<6x12xf32>
    %2 = tpu.concatenate %0, %1 in 0 : vector<2x12xf32>, vector<6x12xf32> -> vector<8x12xf32>
    %c0_1 = arith.constant 0 : index
    %c0_2 = arith.constant 0 : index
    %3 = vector.load %arg1[%c0_1, %c0_2] : memref<568x128xf32, #tpu.memory_space<vmem>>, vector<12x120xf32>
    %cst_3 = arith.constant dense<0.000000e+00> : vector<8x120xf32>
    %4 = tpu.matmul %2, %3, %cst_3 {dimension_numbers = #tpu.dot_dimension_numbers<[1], [0], [0], [1], [0, 0, 1, 1], [], []>} : vector<8x12xf32>, vector<12x120xf32>, vector<8x120xf32> -> vector<8x120xf32>
    %c16 = arith.constant 16 : index
    %c0_4 = arith.constant 0 : index
    %5 = vector.load %arg1[%c16, %c0_4] : memref<568x128xf32, #tpu.memory_space<vmem>>, vector<1x120xf32>
    %6 = vector.broadcast %5 : vector<1x120xf32> to vector<8x120xf32>
    %7 = arith.addf %4, %6 : vector<8x120xf32>
    %cst_5 = arith.constant 0.000000e+00 : f32
    %8 = vector.broadcast %cst_5 : f32 to vector<8x120xf32>
    %9 = arith.maximumf %7, %8 : vector<8x120xf32>
    %cst_6 = arith.constant 0.000000e+00 : f32
    %10 = vector.broadcast %cst_6 : f32 to vector<48x12xf32>
    %cst_7 = arith.constant 0.000000e+00 : f32
    %11 = vector.broadcast %cst_7 : f32 to vector<48x12xf32>
    %12 = vector.extract_strided_slice %9 {offsets = [0, 0], sizes = [8, 12], strides = [1, 1]} : vector<8x120xf32> to vector<8x12xf32>
    %13 = vector.extract_strided_slice %9 {offsets = [0, 12], sizes = [8, 12], strides = [1, 1]} : vector<8x120xf32> to vector<8x12xf32>
    %14 = vector.extract_strided_slice %9 {offsets = [0, 24], sizes = [8, 12], strides = [1, 1]} : vector<8x120xf32> to vector<8x12xf32>
    %15 = vector.extract_strided_slice %9 {offsets = [0, 36], sizes = [8, 12], strides = [1, 1]} : vector<8x120xf32> to vector<8x12xf32>
    %16 = vector.extract_strided_slice %9 {offsets = [0, 48], sizes = [8, 12], strides = [1, 1]} : vector<8x120xf32> to vector<8x12xf32>
    %17 = vector.extract_strided_slice %9 {offsets = [0, 60], sizes = [8, 12], strides = [1, 1]} : vector<8x120xf32> to vector<8x12xf32>
    %18 = vector.extract_strided_slice %9 {offsets = [0, 72], sizes = [8, 12], strides = [1, 1]} : vector<8x120xf32> to vector<8x12xf32>
    %19 = vector.extract_strided_slice %9 {offsets = [0, 84], sizes = [8, 12], strides = [1, 1]} : vector<8x120xf32> to vector<8x12xf32>
    %20 = vector.extract_strided_slice %9 {offsets = [0, 96], sizes = [8, 12], strides = [1, 1]} : vector<8x120xf32> to vector<8x12xf32>
    %21 = vector.extract_strided_slice %9 {offsets = [0, 108], sizes = [8, 12], strides = [1, 1]} : vector<8x120xf32> to vector<8x12xf32>
    %22 = tpu.concatenate %10, %12, %13, %14, %15, %16, %17, %18, %19, %20, %21, %11 in 0 : vector<48x12xf32>, vector<8x12xf32>, vector<8x12xf32>, vector<8x12xf32>, vector<8x12xf32>, vector<8x12xf32>, vector<8x12xf32>, vector<8x12xf32>, vector<8x12xf32>, vector<8x12xf32>, vector<8x12xf32>, vector<48x12xf32> -> vector<176x12xf32>
    %c24 = arith.constant 24 : index
    %c0_8 = arith.constant 0 : index
    %23 = vector.load %arg1[%c24, %c0_8] : memref<568x128xf32, #tpu.memory_space<vmem>>, vector<12x8xf32>
    %c40 = arith.constant 40 : index
    %c0_9 = arith.constant 0 : index
    %24 = vector.load %arg1[%c40, %c0_9] : memref<568x128xf32, #tpu.memory_space<vmem>>, vector<12x8xf32>
    %c56 = arith.constant 56 : index
    %c0_10 = arith.constant 0 : index
    %25 = vector.load %arg1[%c56, %c0_10] : memref<568x128xf32, #tpu.memory_space<vmem>>, vector<12x8xf32>
    %c120 = arith.constant 120 : index
    %c0_11 = arith.constant 0 : index
    %26 = vector.load %arg1[%c120, %c0_11] : memref<568x128xf32, #tpu.memory_space<vmem>>, vector<160x8xf32>
    %27 = vector.extract_strided_slice %22 {offsets = [0, 0], sizes = [160, 12], strides = [1, 1]} : vector<176x12xf32> to vector<160x12xf32>
    %cst_12 = arith.constant dense<0.000000e+00> : vector<160x8xf32>
    %28 = tpu.matmul %27, %23, %cst_12 {dimension_numbers = #tpu.dot_dimension_numbers<[1], [0], [0], [1], [0, 0, 1, 1], [], []>} : vector<160x12xf32>, vector<12x8xf32>, vector<160x8xf32> -> vector<160x8xf32>
    %29 = arith.addf %26, %28 : vector<160x8xf32>
    %30 = vector.extract_strided_slice %22 {offsets = [8, 0], sizes = [160, 12], strides = [1, 1]} : vector<176x12xf32> to vector<160x12xf32>
    %cst_13 = arith.constant dense<0.000000e+00> : vector<160x8xf32>
    %31 = tpu.matmul %30, %24, %cst_13 {dimension_numbers = #tpu.dot_dimension_numbers<[1], [0], [0], [1], [0, 0, 1, 1], [], []>} : vector<160x12xf32>, vector<12x8xf32>, vector<160x8xf32> -> vector<160x8xf32>
    %32 = arith.addf %29, %31 : vector<160x8xf32>
    %33 = vector.extract_strided_slice %22 {offsets = [16, 0], sizes = [160, 12], strides = [1, 1]} : vector<176x12xf32> to vector<160x12xf32>
    %cst_14 = arith.constant dense<0.000000e+00> : vector<160x8xf32>
    %34 = tpu.matmul %33, %25, %cst_14 {dimension_numbers = #tpu.dot_dimension_numbers<[1], [0], [0], [1], [0, 0, 1, 1], [], []>} : vector<160x12xf32>, vector<12x8xf32>, vector<160x8xf32> -> vector<160x8xf32>
    %35 = arith.addf %32, %34 : vector<160x8xf32>
    %cst_15 = arith.constant 0.000000e+00 : f32
    %36 = vector.broadcast %cst_15 : f32 to vector<160x8xf32>
    %37 = arith.maximumf %35, %36 : vector<160x8xf32>
    %c72 = arith.constant 72 : index
    %c0_16 = arith.constant 0 : index
    %38 = vector.load %arg1[%c72, %c0_16] : memref<568x128xf32, #tpu.memory_space<vmem>>, vector<8x4xf32>
    %c80 = arith.constant 80 : index
    %c0_17 = arith.constant 0 : index
    %39 = vector.load %arg1[%c80, %c0_17] : memref<568x128xf32, #tpu.memory_space<vmem>>, vector<8x4xf32>
    %c88 = arith.constant 88 : index
    %c0_18 = arith.constant 0 : index
    %40 = vector.load %arg1[%c88, %c0_18] : memref<568x128xf32, #tpu.memory_space<vmem>>, vector<8x4xf32>
    %c280 = arith.constant 280 : index
    %c0_19 = arith.constant 0 : index
    %41 = vector.load %arg1[%c280, %c0_19] : memref<568x128xf32, #tpu.memory_space<vmem>>, vector<144x4xf32>
    %42 = vector.extract_strided_slice %37 {offsets = [0, 0], sizes = [144, 8], strides = [1, 1]} : vector<160x8xf32> to vector<144x8xf32>
    %cst_20 = arith.constant dense<0.000000e+00> : vector<144x4xf32>
    %43 = tpu.matmul %42, %38, %cst_20 {dimension_numbers = #tpu.dot_dimension_numbers<[1], [0], [0], [1], [0, 0, 1, 1], [], []>} : vector<144x8xf32>, vector<8x4xf32>, vector<144x4xf32> -> vector<144x4xf32>
    %44 = arith.addf %41, %43 : vector<144x4xf32>
    %45 = vector.extract_strided_slice %37 {offsets = [8, 0], sizes = [144, 8], strides = [1, 1]} : vector<160x8xf32> to vector<144x8xf32>
    %cst_21 = arith.constant dense<0.000000e+00> : vector<144x4xf32>
    %46 = tpu.matmul %45, %39, %cst_21 {dimension_numbers = #tpu.dot_dimension_numbers<[1], [0], [0], [1], [0, 0, 1, 1], [], []>} : vector<144x8xf32>, vector<8x4xf32>, vector<144x4xf32> -> vector<144x4xf32>
    %47 = arith.addf %44, %46 : vector<144x4xf32>
    %48 = vector.extract_strided_slice %37 {offsets = [16, 0], sizes = [144, 8], strides = [1, 1]} : vector<160x8xf32> to vector<144x8xf32>
    %cst_22 = arith.constant dense<0.000000e+00> : vector<144x4xf32>
    %49 = tpu.matmul %48, %40, %cst_22 {dimension_numbers = #tpu.dot_dimension_numbers<[1], [0], [0], [1], [0, 0, 1, 1], [], []>} : vector<144x8xf32>, vector<8x4xf32>, vector<144x4xf32> -> vector<144x4xf32>
    %50 = arith.addf %47, %49 : vector<144x4xf32>
    %cst_23 = arith.constant 0.000000e+00 : f32
    %51 = vector.broadcast %cst_23 : f32 to vector<144x4xf32>
    %52 = arith.maximumf %50, %51 : vector<144x4xf32>
    %c96 = arith.constant 96 : index
    %c0_24 = arith.constant 0 : index
    %53 = vector.load %arg1[%c96, %c0_24] : memref<568x128xf32, #tpu.memory_space<vmem>>, vector<4x128xf32>
    %c104 = arith.constant 104 : index
    %c0_25 = arith.constant 0 : index
    %54 = vector.load %arg1[%c104, %c0_25] : memref<568x128xf32, #tpu.memory_space<vmem>>, vector<4x128xf32>
    %c112 = arith.constant 112 : index
    %c0_26 = arith.constant 0 : index
    %55 = vector.load %arg1[%c112, %c0_26] : memref<568x128xf32, #tpu.memory_space<vmem>>, vector<4x128xf32>
    %c424 = arith.constant 424 : index
    %c0_27 = arith.constant 0 : index
    %56 = vector.load %arg1[%c424, %c0_27] : memref<568x128xf32, #tpu.memory_space<vmem>>, vector<1x128xf32>
    %57 = vector.extract_strided_slice %52 {offsets = [0, 0], sizes = [128, 4], strides = [1, 1]} : vector<144x4xf32> to vector<128x4xf32>
    %cst_28 = arith.constant dense<0.000000e+00> : vector<128x128xf32>
    %58 = tpu.matmul %57, %53, %cst_28 {dimension_numbers = #tpu.dot_dimension_numbers<[1], [0], [0], [1], [0, 0, 1, 1], [], []>} : vector<128x4xf32>, vector<4x128xf32>, vector<128x128xf32> -> vector<128x128xf32>
    %59 = vector.broadcast %56 : vector<1x128xf32> to vector<128x128xf32>
    %60 = arith.addf %59, %58 : vector<128x128xf32>
    %61 = vector.extract_strided_slice %52 {offsets = [8, 0], sizes = [128, 4], strides = [1, 1]} : vector<144x4xf32> to vector<128x4xf32>
    %cst_29 = arith.constant dense<0.000000e+00> : vector<128x128xf32>
    %62 = tpu.matmul %61, %54, %cst_29 {dimension_numbers = #tpu.dot_dimension_numbers<[1], [0], [0], [1], [0, 0, 1, 1], [], []>} : vector<128x4xf32>, vector<4x128xf32>, vector<128x128xf32> -> vector<128x128xf32>
    %63 = arith.addf %60, %62 : vector<128x128xf32>
    %64 = vector.extract_strided_slice %52 {offsets = [16, 0], sizes = [128, 4], strides = [1, 1]} : vector<144x4xf32> to vector<128x4xf32>
    %cst_30 = arith.constant dense<0.000000e+00> : vector<128x128xf32>
    %65 = tpu.matmul %64, %55, %cst_30 {dimension_numbers = #tpu.dot_dimension_numbers<[1], [0], [0], [1], [0, 0, 1, 1], [], []>} : vector<128x4xf32>, vector<4x128xf32>, vector<128x128xf32> -> vector<128x128xf32>
    %66 = arith.addf %63, %65 : vector<128x128xf32>
    %cst_31 = arith.constant 0.000000e+00 : f32
    %67 = vector.broadcast %cst_31 : f32 to vector<128x128xf32>
    %68 = arith.maximumf %66, %67 : vector<128x128xf32>
    %c432 = arith.constant 432 : index
    %c0_32 = arith.constant 0 : index
    %69 = vector.load %arg1[%c432, %c0_32] : memref<568x128xf32, #tpu.memory_space<vmem>>, vector<128x8xf32>
    %cst_33 = arith.constant dense<0.000000e+00> : vector<128x8xf32>
    %70 = tpu.matmul %68, %69, %cst_33 {dimension_numbers = #tpu.dot_dimension_numbers<[1], [0], [0], [1], [0, 0, 1, 1], [], []>} : vector<128x128xf32>, vector<128x8xf32>, vector<128x8xf32> -> vector<128x8xf32>
    %c560 = arith.constant 560 : index
    %c0_34 = arith.constant 0 : index
    %71 = vector.load %arg1[%c560, %c0_34] : memref<568x128xf32, #tpu.memory_space<vmem>>, vector<1x8xf32>
    %72 = vector.broadcast %71 : vector<1x8xf32> to vector<128x8xf32>
    %73 = arith.addf %70, %72 : vector<128x8xf32>
    %74 = vector.extract_strided_slice %73 {offsets = [0, 0], sizes = [8, 8], strides = [1, 1]} : vector<128x8xf32> to vector<8x8xf32>
    %75 = vector.extract_strided_slice %73 {offsets = [8, 0], sizes = [8, 8], strides = [1, 1]} : vector<128x8xf32> to vector<8x8xf32>
    %76 = vector.extract_strided_slice %73 {offsets = [16, 0], sizes = [8, 8], strides = [1, 1]} : vector<128x8xf32> to vector<8x8xf32>
    %77 = vector.extract_strided_slice %73 {offsets = [24, 0], sizes = [8, 8], strides = [1, 1]} : vector<128x8xf32> to vector<8x8xf32>
    %78 = vector.extract_strided_slice %73 {offsets = [32, 0], sizes = [8, 8], strides = [1, 1]} : vector<128x8xf32> to vector<8x8xf32>
    %79 = vector.extract_strided_slice %73 {offsets = [40, 0], sizes = [8, 8], strides = [1, 1]} : vector<128x8xf32> to vector<8x8xf32>
    %80 = vector.extract_strided_slice %73 {offsets = [48, 0], sizes = [8, 8], strides = [1, 1]} : vector<128x8xf32> to vector<8x8xf32>
    %81 = vector.extract_strided_slice %73 {offsets = [56, 0], sizes = [8, 8], strides = [1, 1]} : vector<128x8xf32> to vector<8x8xf32>
    %82 = vector.extract_strided_slice %73 {offsets = [64, 0], sizes = [8, 8], strides = [1, 1]} : vector<128x8xf32> to vector<8x8xf32>
    %83 = vector.extract_strided_slice %73 {offsets = [72, 0], sizes = [8, 8], strides = [1, 1]} : vector<128x8xf32> to vector<8x8xf32>
    %84 = vector.extract_strided_slice %73 {offsets = [80, 0], sizes = [8, 8], strides = [1, 1]} : vector<128x8xf32> to vector<8x8xf32>
    %85 = vector.extract_strided_slice %73 {offsets = [88, 0], sizes = [8, 8], strides = [1, 1]} : vector<128x8xf32> to vector<8x8xf32>
    %86 = vector.extract_strided_slice %73 {offsets = [96, 0], sizes = [8, 8], strides = [1, 1]} : vector<128x8xf32> to vector<8x8xf32>
    %87 = vector.extract_strided_slice %73 {offsets = [104, 0], sizes = [8, 8], strides = [1, 1]} : vector<128x8xf32> to vector<8x8xf32>
    %88 = vector.extract_strided_slice %73 {offsets = [112, 0], sizes = [8, 8], strides = [1, 1]} : vector<128x8xf32> to vector<8x8xf32>
    %89 = vector.extract_strided_slice %73 {offsets = [120, 0], sizes = [8, 8], strides = [1, 1]} : vector<128x8xf32> to vector<8x8xf32>
    %90 = tpu.concatenate %74, %75, %76, %77, %78, %79, %80, %81, %82, %83, %84, %85, %86, %87, %88, %89 in 1 : vector<8x8xf32>, vector<8x8xf32>, vector<8x8xf32>, vector<8x8xf32>, vector<8x8xf32>, vector<8x8xf32>, vector<8x8xf32>, vector<8x8xf32>, vector<8x8xf32>, vector<8x8xf32>, vector<8x8xf32>, vector<8x8xf32>, vector<8x8xf32>, vector<8x8xf32>, vector<8x8xf32>, vector<8x8xf32> -> vector<8x128xf32>
    %c0_35 = arith.constant 0 : index
    %c0_36 = arith.constant 0 : index
    %91 = vector.load %arg2[%c0_35, %c0_36] : memref<8x128xf32, #tpu.memory_space<vmem>>, vector<8x128xf32>
    tpu.vector_store %arg2[%c0_35, %c0_36], %90 {strides = array<i32>} : memref<8x128xf32, #tpu.memory_space<vmem>>, vector<8x128xf32>,
    return
  }
}

</mosaic_0001>

<bundles_post_ra>
// kernel: tpu_custom_call.1
= control target key start
LH: loop header
LB: loop body
LE: loop exit
PB: predicated region body
PF: predicated region fallthrough
CT: control target
= control target key end

     0   :  { %7 = vsyncpa [#allocation3], 0  ;;  %s3505_s0 = inlined_call_operand.hbm [shape: f32[2,12], index: 0, kind: input, shape index: {}]   ;;  %s3506_s1 = inlined_call_operand.hbm [shape: f32[568,128], index: 1, kind: input, shape index: {}]   ;;  %s3507_s2 = inlined_call_operand.hbm [shape: f32[8,128], index: 2, kind: output, shape index: {}]  }
   0x1   :  { %8 = vsyncpa [#allocation6], 0 }
   0x2   :  { %9 = vsyncpa [#allocation4], 0  ;;  %s3015_s9 = smov [#allocation2]   ;;  %s3016_s11 = smov [#allocation5]  }
   0x3   :  { %s16_s10 = sshll.u32 %s3015_s9, 4  ;;  %s25_s12 = sshll.u32 %s3016_s11, 4  ;;  %s17_s10 = int_to_ptr.vmem [resolvable:$true] %s16_s10  ;;  %s26_s12 = int_to_ptr.vmem [resolvable:$true] %s25_s12 }
   0x4   :  { %s2957_s13 = scalar_lea.vmem %s17_s10, 32  ;;  %p2962_p1 = scmp.lt.s32.totalorder %s17_s10, %s17_s10 }
   0x5   :  { %p2958_p0 = scmp.ne.s32.totalorder %s17_s10, %s2957_s13  ;;  %p2963_p2 = scmp.lt.s32.totalorder %s2957_s13, %s2957_s13 }
   0x7   :  { %p2964_p3 = por %p2963_p2, %p2962_p1 }
   0x9   :  { %p2965_p4 = pnand %p2964_p3, %p2958_p0 }
   0xb   :  { %2968 = shalt.err (!%p2965_p4)
}
   0xc   :  { %19 = dma.hbm_to_vmem [thread:$0]  %s3505_s0, 32, %s17_s10, [#allocation3]  }
   0xd   :  { %s2977_s16 = scalar_lea.vmem %s26_s12, 9088  ;;  %p2982_p6 = scmp.lt.s32.totalorder %s26_s12, %s26_s12 }
   0xe   :  { %p2978_p5 = scmp.ne.s32.totalorder %s26_s12, %s2977_s16  ;;  %p2983_p7 = scmp.lt.s32.totalorder %s2977_s16, %s2977_s16 }
  0x10   :  { %p2984_p8 = por %p2983_p7, %p2982_p6 }
  0x12   :  { %p2985_p9 = pnand %p2984_p8, %p2978_p5 }
  0x14   :  { %2988 = shalt.err (!%p2985_p9)
}
  0x15   :  { %s3017_s17 = smov 128   ;;  %s3018_s18 = smov 8  }
  0x16   :  { %31 = dma.hbm_to_vmem [thread:$0]  %s3506_s1, 9088, %s26_s12, [#allocation6], %s3017_s17, %s3017_s17, %s3018_s18  }
  0x17   :  { %3009 = dma.done.wait [#allocation3], 32  }
  0x18   :  { %3010 = vsyncadd [#allocation3], 4294967264 }
  0x19   :  { %3011 = dma.done.wait [#allocation6], 9088  }
  0x1a   :  { %3012 = vsyncadd [#allocation6], 4294958208  ;;  %v3019_v0 = vmov 0.0   ;;  %vm3020_vm0 = vmmov 0   ;;  %vm52_vm1 = vcmask 1043456   ;;  %vm39_vm2 = vcmask 1041408  }
  0x1b   :  { %2593 = vmatprep.subr.mxu0 %v3019_v0  ;;  %2597 = vmatprep.mubr.msk.f32.mxu0 %vm3020_vm0, %v3019_v0  ;;  %v42_v1 = vld [vmem:[#allocation5 + $0x8] sm:$0xf]  ;;  %v41_v2 = vld [vmem:[#allocation5] sm:$0xff]  ;;  %v38_v3 = vld [vmem:[#allocation2] sm:$0x3]  ;;  %vm48_vm3 = vcmask 97280  }
  0x1c   :  { %2604 = vmatprep.mubr.f32.mxu1 %v3019_v0  ;;  %2594 = vmatpush3.msk.msra.mxu0 %vm52_vm1, %v42_v1  ;;  %v40_v4 = vsel %vm39_vm2, %v38_v3, 0.0  ;;  %v147_v5 = vld [vmem:[#allocation5 + $0x20] sm:$0xf]  ;;  %v146_v6 = vld [vmem:[#allocation5 + $0x18] sm:$0xff]  ;;  %v149_v7 = vld [vmem:[#allocation5 + $0x30] sm:$0xf] }
  0x1d   :  { %2595 = vmatprep.subr.mxu0 %v3019_v0  ;;  %2600 = vmatprep.subr.msk.mxu1 %vm52_vm1, %v147_v5  ;;  %v148_v8 = vld [vmem:[#allocation5 + $0x28] sm:$0xff]  ;;  %v151_v9 = vld [vmem:[#allocation5 + $0x40] sm:$0xf]  ;;  %v2241_v10 = vld [vmem:[#allocation5 + $0x10] ss:$0 sm:$0xff]  ;;  %s3021_s0 = smov 92  }
  0x1e   :  { %2596 = vmatpush3.msra.mxu0 %v41_v2  ;;  %2601 = vmatpush3.msk.msra.mxu1 %vm52_vm1, %v147_v5  ;;  %v150_v12 = vld [vmem:[#allocation5 + $0x38] sm:$0xff]  ;;  %s3022_s1 = smov 116   ;;  %s3023_s21 = smov 80   ;;  %v779_v16 = vld [vmem:[#allocation5 + $0x48] sm:$0xff]  ;;  %v3152_v27 = vld [vmem:[#allocation5 + $0x50] sm:$0xff]  ;;  %vm800_vm4 = vcmask 64512  }
  0x1f   :  { %2598 = vmatmul.mubr.msk.f32.vlgmr.msra.gmra.mxu0 %vm48_vm3, %v40_v4  ;;  %2602 = vmatprep.subr.mxu1 %v146_v6  ;;  %s3024_s22 = smov 104   ;;  %s3025_s23 = smov 56   ;;  %v781_v26 = vld [vmem:[#allocation5 + $0x58] sm:$0xff]  ;;  %v153_v54 = vld [vmem:[#allocation5 + $0x80] sm:$0xff]  ;;  %v155_v61 = vld [vmem:[#allocation5 + $0x90] sm:$0xff]  ;;  %vm1402_vm5 = vcmask 31744  }
  0x20   :  { %2634 = vmatprep.subr.msk.mxu0 %vm52_vm1, %v149_v7  ;;  %2603 = vmatpush3.msra.mxu1 %v146_v6  ;;  %s3026_s24 = smov 68   ;;  %s3027_s25 = smov 32   ;;  %v152_v55 = vld [vmem:[#allocation5 + $0x78] sm:$0xff]  ;;  %v154_v62 = vld [vmem:[#allocation5 + $0x88] sm:$0xff]  ;;  %v157_v6 = vld [vmem:[#allocation5 + $0xa0] sm:$0xff]  ;;  %vm2196_vm6 = vcmask 130048  }
  0x21   :  { %2635 = vmatpush3.msk.msra.mxu0 %vm52_vm1, %v149_v7  ;;  %2605 = vmatmul.mubr.f32.vlgmr.msra.gmra.mxu1 %v3019_v0  ;;  %s3028_s26 = smov 44   ;;  %s3029_s27 = smov 20   ;;  %v156_v7 = vld [vmem:[#allocation5 + $0x98] sm:$0xff]  ;;  %vm2198_vm7 = vcmask 195584   ;;  %vm2200_vm8 = vcmask 261120   ;;  %vm2202_vm9 = vcmask 326656  }
  0x22   :  { %2636 = vmatprep.subr.mxu0 %v148_v8  ;;  %2638 = vmatprep.mubr.f32.mxu0 %v3019_v0  ;;  %s3030_s28 = smov 24   ;;  %s3031_s29 = smov 16   ;;  %vm2204_vm10 = vcmask 392192   ;;  %vm2206_vm11 = vcmask 457728   ;;  %vm2208_vm12 = vcmask 523264   ;;  %vm2210_vm13 = vcmask 588800  }
  0x23   :  { %2637 = vmatpush3.msra.mxu0 %v148_v8  ;;  %2607 = vmatprep.mubr.f32.mxu1 %v3019_v0  ;;  %s3032_s30 = smov 40   ;;  %s3033_s3 = smov 48   ;;  %vm2212_vm14 = vcmask 654336   ;;  %vm2214_vm15 = vcmask 719872   ;;  %vm2216_vm0 = vcmask 785408   ;;  %vm2220_vm2 = vcmask 916480  }
  0x24   :  { %2639 = vmatmul.mubr.f32.vlgmr.msra.gmra.mxu0 %v3019_v0  ;;  %2668 = vmatprep.subr.msk.mxu1 %vm52_vm1, %v151_v9  ;;  %s3034_s4 = smov 72   ;;  %s3035_s5 = smov 64  }
  0x25   :  { %2608 = vmatmul.mubr.f32.gmra.mxu1 %v3019_v0  ;;  %2641 = vmatprep.mubr.f32.mxu0 %v3019_v0  ;;  %s3036_s6 = smov 88   ;;  %s3037_s7 = smov 96  }
  0x26   :  { %2610 = vmatprep.mubr.f32.mxu1 %v3019_v0  ;;  %2669 = vmatpush3.msk.msra.mxu1 %vm52_vm1, %v151_v9  ;;  %s3038_s8 = smov 120   ;;  %s3039_s9 = smov 112  }
  0x27   :  { %2670 = vmatprep.subr.mxu1 %v150_v12  ;;  %2702 = vmatprep.subr.mxu0 %v779_v16  ;;  %s3040_s10 = smov [#allocation7]  }
  0x28   :  { %2642 = vmatmul.mubr.f32.gmra.mxu0 %v3019_v0  ;;  %2671 = vmatpush3.msra.mxu1 %v150_v12  ;;  %s2231_s11 = sshll.u32 %s3040_s10, 4  ;;  %s2232_s11 = int_to_ptr.vmem [resolvable:$true] %s2231_s11 }
  0x29   :  { %2611 = vmatmul.mubr.f32.gmra.mxu1 %v3019_v0  ;;  %2644 = vmatprep.mubr.f32.mxu0 %v3019_v0  ;;  %s2989_s12 = scalar_lea.vmem %s2232_s11, 128  ;;  %p2994_p11 = scmp.lt.s32.totalorder %s2232_s11, %s2232_s11 }
  0x2a   :  { %2703 = vmatpush3.msra.mxu0 %v779_v16  ;;  %2760 = vmatprep.subr.mxu1 %v781_v26  ;;  %p2990_p10 = scmp.ne.s32.totalorder %s2232_s11, %s2989_s12  ;;  %p2995_p12 = scmp.lt.s32.totalorder %s2989_s12, %s2989_s12 }
  0x2b   :  { %2731 = vmatprep.subr.mxu0 %v3152_v27 }
  0x2c   :  { %p2996_p13 = por %p2995_p12, %p2994_p11 }
  0x2e   :  { %p2997_p0 = pnand %p2996_p13, %p2990_p10 }
  0xdf   :  { %v122_v11 = vpop.f32.mrf.mxu0 }
  0xe0   :  { %v123_v13 = vadd.f32 %v2241_v10, %v122_v11 }
  0xe1   :  { %v2599_v14 = vpop.f32.mrf.mxu0  ;;  %v2606_v28 = vpop.f32.mrf.mxu1 }
  0xe2   :  { %v3085_v15 = vmax.f32 %v123_v13, 0.0  ;;  %v364_v58 = vadd.f32 %v2606_v28, %v153_v54 }
  0xe3   :  { %v264_v29 = vpop.f32.mrf.mxu1 }
  0xe4   :  { %132 = vrot.lane.b32.xlu1 %v3085_v15, %s3021_s0  ;;  %128 = vrot.lane.b32.xlu0 %v3085_v15, %s3022_s1  ;;  %v2640_v31 = vpop.f32.mrf.mxu0  ;;  %v363_v60 = vadd.f32 %v264_v29, %v152_v55  ;;  %v161_v29 = vld [vmem:[#allocation5 + $0xc0] sm:$0xff]  ;;  %v163_v55 = vld [vmem:[#allocation5 + $0xd0] sm:$0xff] }
  0xe5   :  { %2613 = vmatprep.mubr.msk.f32.mxu1 %vm48_vm3, %v3085_v15  ;;  %2645 = vmatmul.mubr.msk.f32.gmra.mxu0 %vm48_vm3, %v3085_v15  ;;  %v2609_v30 = vpop.f32.mrf.mxu1  ;;  %v552_v1 = vadd.f32 %v2640_v31, %v364_v58 }
  0xe6   :  { %v452_v33 = vpop.f32.mrf.mxu0  ;;  %v366_v2 = vadd.f32 %v2609_v30, %v155_v61 }
  0xe7   :  { %v274_v32 = vpop.f32.mrf.mxu1  ;;  %v551_v4 = vadd.f32 %v452_v33, %v363_v60  ;;  %v162_v60 = vld [vmem:[#allocation5 + $0xc8] sm:$0xff] }
  0xe8   :  { %134 = vrot.lane.b32.xlu1 %v3085_v15, %s3023_s21  ;;  %130 = vrot.lane.b32.xlu0 %v3085_v15, %s3024_s22  ;;  %v2643_v35 = vpop.f32.mrf.mxu0  ;;  %v365_v5 = vadd.f32 %v274_v32, %v154_v62  ;;  %v160_v32 = vld [vmem:[#allocation5 + $0xb8] sm:$0xff] }
  0xe9   :  { %v2612_v34 = vpop.f32.mrf.mxu1  ;;  %v554_v12 = vadd.f32 %v2643_v35, %v366_v2 }
  0xea   :  { %v462_v38 = vpop.f32.mrf.mxu0  ;;  %v368_v13 = vadd.f32 %v2612_v34, %v157_v6 }
  0xeb   :  { %v284_v36 = vpop.f32.mrf.mxu1 }
  0xec   :  { %138 = vrot.lane.b32.xlu1 %v3085_v15, %s3025_s23  ;;  %136 = vrot.lane.b32.xlu0 %v3085_v15, %s3026_s24  ;;  %v367_v16 = vadd.f32 %v284_v36, %v156_v7  ;;  %v164_v7 = vld [vmem:[#allocation5 + $0xd8] sm:$0xff] }
  0xf0   :  { %142 = vrot.lane.b32.xlu1 %v3085_v15, %s3027_s25  ;;  %140 = vrot.lane.b32.xlu0 %v3085_v15, %s3028_s26 }
  0xf4   :  { %144 = vrot.lane.b32.xlu0 %v3085_v15, %s3029_s27 }
 0x156   :  { %v133_v17 = vpop.permute.xlu1 %132  ;;  %v129_v18 = vpop.permute.xlu0 %128 }
 0x157   :  { %2614 = vmatmul.mubr.msk.f32.gmra.mxu1 %vm48_vm3, %v129_v18  ;;  %2647 = vmatprep.mubr.msk.f32.mxu0 %vm48_vm3, %v129_v18 }
 0x15a   :  { %v135_v19 = vpop.permute.xlu1 %134  ;;  %v131_v20 = vpop.permute.xlu0 %130 }
 0x15b   :  { %2616 = vmatprep.mubr.msk.f32.mxu1 %vm48_vm3, %v131_v20  ;;  %2648 = vmatmul.mubr.msk.f32.gmra.mxu0 %vm48_vm3, %v131_v20 }
 0x15c   :  { %2617 = vmatmul.mubr.msk.f32.gmra.mxu1 %vm48_vm3, %v133_v17  ;;  %2650 = vmatprep.mubr.msk.f32.mxu0 %vm48_vm3, %v133_v17 }
 0x15d   :  { %2619 = vmatprep.mubr.msk.f32.mxu1 %vm48_vm3, %v135_v19 }
 0x15e   :  { %v139_v21 = vpop.permute.xlu1 %138  ;;  %v137_v22 = vpop.permute.xlu0 %136 }
 0x15f   :  { %2651 = vmatmul.mubr.msk.f32.gmra.mxu0 %vm48_vm3, %v135_v19 }
 0x160   :  { %2620 = vmatmul.mubr.msk.f32.gmra.mxu1 %vm48_vm3, %v137_v22  ;;  %2653 = vmatprep.mubr.msk.f32.mxu0 %vm48_vm3, %v137_v22 }
 0x161   :  { %2622 = vmatprep.mubr.msk.f32.mxu1 %vm48_vm3, %v139_v21 }
 0x162   :  { %v141_v23 = vpop.permute.xlu0 %140  ;;  %v143_v24 = vpop.permute.xlu1 %142 }
 0x163   :  { %2654 = vmatmul.mubr.msk.f32.gmra.mxu0 %vm48_vm3, %v139_v21 }
 0x164   :  { %2623 = vmatmul.mubr.msk.f32.gmra.mxu1 %vm48_vm3, %v141_v23  ;;  %2656 = vmatprep.mubr.msk.f32.mxu0 %vm48_vm3, %v141_v23 }
 0x165   :  { %2625 = vmatprep.mubr.msk.f32.mxu1 %vm48_vm3, %v143_v24 }
 0x166   :  { %v145_v25 = vpop.permute.xlu0 %144 }
 0x167   :  { %2657 = vmatmul.mubr.msk.f32.gmra.mxu0 %vm48_vm3, %v143_v24 }
 0x168   :  { %2626 = vmatmul.mubr.msk.f32.gmra.mxu1 %vm48_vm3, %v145_v25  ;;  %2659 = vmatprep.mubr.msk.f32.mxu0 %vm48_vm3, %v145_v25 }
 0x169   :  { %2628 = vmatprep.mubr.f32.mxu1 %v3019_v0 }
 0x16b   :  { %2660 = vmatmul.mubr.f32.gmra.mxu0 %v3019_v0 }
 0x16c   :  { %2629 = vmatmul.mubr.f32.gmra.mxu1 %v3019_v0  ;;  %2662 = vmatprep.mubr.f32.mxu0 %v3019_v0 }
 0x16d   :  { %2631 = vmatprep.mubr.f32.mxu1 %v3019_v0 }
 0x16f   :  { %2663 = vmatmul.mubr.f32.gmra.mxu0 %v3019_v0 }
 0x170   :  { %2632 = vmatmul.mubr.f32.gmra.mxu1 %v3019_v0  ;;  %2665 = vmatprep.mubr.f32.mxu0 %v3019_v0 }
 0x171   :  { %2672 = vmatprep.mubr.f32.mxu1 %v3019_v0 }
 0x173   :  { %2666 = vmatmul.mubr.f32.gmra.mxu0 %v3019_v0 }
 0x174   :  { %2673 = vmatmul.mubr.f32.vlgmr.msra.gmra.mxu1 %v3019_v0 }
 0x175   :  { %2675 = vmatprep.mubr.f32.mxu1 %v3019_v0  ;;  %2761 = vmatpush3.msra.mxu1 %v781_v26 }
 0x178   :  { %2676 = vmatmul.mubr.f32.gmra.mxu1 %v3019_v0 }
 0x179   :  { %2678 = vmatprep.mubr.msk.f32.mxu1 %vm48_vm3, %v3085_v15  ;;  %v553_v15 = vadd.f32 %v462_v38, %v365_v5  ;;  %v165_v5 = vld [vmem:[#allocation5 + $0xe0] sm:$0xff] }
 0x17c   :  { %2679 = vmatmul.mubr.msk.f32.gmra.mxu1 %vm48_vm3, %v129_v18 }
 0x17d   :  { %2681 = vmatprep.mubr.msk.f32.mxu1 %vm48_vm3, %v131_v20 }
 0x180   :  { %2682 = vmatmul.mubr.msk.f32.gmra.mxu1 %vm48_vm3, %v133_v17 }
 0x181   :  { %2684 = vmatprep.mubr.msk.f32.mxu1 %vm48_vm3, %v135_v19 }
 0x184   :  { %2685 = vmatmul.mubr.msk.f32.gmra.mxu1 %vm48_vm3, %v137_v22  ;;  %v159_v22 = vld [vmem:[#allocation5 + $0xb0] sm:$0xff] }
 0x185   :  { %2687 = vmatprep.mubr.msk.f32.mxu1 %vm48_vm3, %v139_v21 }
 0x188   :  { %2688 = vmatmul.mubr.msk.f32.gmra.mxu1 %vm48_vm3, %v141_v23 }
 0x189   :  { %2690 = vmatprep.mubr.msk.f32.mxu1 %vm48_vm3, %v143_v24 }
 0x18c   :  { %2691 = vmatmul.mubr.msk.f32.gmra.mxu1 %vm48_vm3, %v145_v25  ;;  %v158_v25 = vld [vmem:[#allocation5 + $0xa8] sm:$0xff]  ;;  %vm2222_vm3 = vcmask 982016  }
 0x18d   :  { %2693 = vmatprep.mubr.f32.mxu1 %v3019_v0 }
 0x190   :  { %2694 = vmatmul.mubr.f32.gmra.mxu1 %v3019_v0 }
 0x191   :  { %2696 = vmatprep.mubr.f32.mxu1 %v3019_v0 }
 0x194   :  { %2697 = vmatmul.mubr.f32.gmra.mxu1 %v3019_v0 }
 0x195   :  { %2699 = vmatprep.mubr.f32.mxu1 %v3019_v0 }
 0x198   :  { %2700 = vmatmul.mubr.f32.gmra.mxu1 %v3019_v0 }
 0x1a5   :  { %v2646_v40 = vpop.f32.mrf.mxu0 }
 0x1a6   :  { %v556_v24 = vadd.f32 %v2646_v40, %v368_v13 }
 0x1a7   :  { %v472_v43 = vpop.f32.mrf.mxu0 }
 0x1a8   :  { %v555_v28 = vadd.f32 %v472_v43, %v367_v16  ;;  %v167_v16 = vld [vmem:[#allocation5 + $0xf0] sm:$0xff] }
 0x217   :  { %v2615_v37 = vpop.f32.mrf.mxu1 }
 0x218   :  { %v370_v31 = vadd.f32 %v2615_v37, %v159_v22 }
 0x219   :  { %v3155_v39 = vpop.f32.mrf.mxu1 }
 0x21a   :  { %v369_v38 = vadd.f32 %v3155_v39, %v158_v25 }
 0x21b   :  { %v3163_v45 = vpop.f32.mrf.mxu0 }
 0x21c   :  { %v3157_v41 = vpop.f32.mrf.mxu1  ;;  %v558_v43 = vadd.f32 %v3163_v45, %v370_v31  ;;  %v168_v31 = vld [vmem:[#allocation5 + $0xf8] sm:$0xff] }
 0x21d   :  { %v3169_v48 = vpop.f32.mrf.mxu0 }
 0x21e   :  { %v3159_v42 = vpop.f32.mrf.mxu1  ;;  %v557_v39 = vadd.f32 %v3169_v48, %v369_v38 }
 0x21f   :  { %v3175_v51 = vpop.f32.mrf.mxu0  ;;  %v371_v54 = vadd.f32 %v3159_v42, %v160_v32 }
 0x220   :  { %v3161_v44 = vpop.f32.mrf.mxu1 }
 0x221   :  { %v3181_v56 = vpop.f32.mrf.mxu0  ;;  %v374_v42 = vadd.f32 %v3161_v44, %v163_v55 }
 0x222   :  { %v3165_v46 = vpop.f32.mrf.mxu1 }
 0x223   :  { %v3187_v63 = vpop.f32.mrf.mxu0 }
 0x224   :  { %v3167_v47 = vpop.f32.mrf.mxu1 }
 0x225   :  { %v3191_v8 = vpop.f32.mrf.mxu0 }
 0x226   :  { %v3171_v49 = vpop.f32.mrf.mxu1 }
 0x227   :  { %v3195_v18 = vpop.f32.mrf.mxu0 }
 0x228   :  { %v3173_v50 = vpop.f32.mrf.mxu1 }
 0x229   :  { %v3205_v33 = vpop.f32.mrf.mxu0 }
 0x22a   :  { %v3177_v52 = vpop.f32.mrf.mxu1 }
 0x22b   :  { %v2661_v61 = vpop.f32.mrf.mxu0 }
 0x22c   :  { %v3179_v53 = vpop.f32.mrf.mxu1 }
 0x22e   :  { %v3183_v57 = vpop.f32.mrf.mxu1 }
 0x230   :  { %v3185_v59 = vpop.f32.mrf.mxu1 }
 0x232   :  { %v3189_v0 = vpop.f32.mrf.mxu1 }
 0x234   :  { %v2674_v3 = vpop.f32.mrf.mxu1 }
 0x235   :  { %v3193_v9 = vadd.f32 %v2674_v3, %v552_v1  ;;  %v559_v3 = vadd.f32 %v3181_v56, %v371_v54  ;;  %v562_v56 = vadd.f32 %v3187_v63, %v374_v42 }
 0x236   :  { %v640_v10 = vpop.f32.mrf.mxu1 }
 0x237   :  { %v739_v11 = vadd.f32 %v640_v10, %v551_v4  ;;  %v760_v19 = vmax.f32 %v3193_v9, 0.0  ;;  %v373_v4 = vadd.f32 %v3165_v46, %v162_v60  ;;  %v522_v10 = vpop.f32.mrf.mxu0  ;;  %v376_v46 = vadd.f32 %v3167_v47, %v165_v5  ;;  %v1398_v9 = vld [vmem:[#allocation5 + $0x60] sm:$0xf] }
 0x238   :  { %v2677_v14 = vpop.f32.mrf.mxu1 }
 0x239   :  { %v759_v17 = vmax.f32 %v739_v11, 0.0  ;;  %v742_v20 = vadd.f32 %v2677_v14, %v554_v12  ;;  %v561_v14 = vadd.f32 %v3191_v8, %v373_v4  ;;  %v564_v8 = vadd.f32 %v3195_v18, %v376_v46 }
 0x23a   :  { %v650_v21 = vpop.f32.mrf.mxu1 }
 0x23b   :  { %v741_v23 = vadd.f32 %v650_v21, %v553_v15  ;;  %2704 = vmatprep.mubr.msk.f32.mxu0 %vm800_vm4, %v759_v17  ;;  %v3207_v34 = vmax.f32 %v742_v20, 0.0  ;;  %v375_v15 = vadd.f32 %v3171_v49, %v164_v7  ;;  %v166_v20 = vld [vmem:[#allocation5 + $0xe8] sm:$0xff]  ;;  %v2664_v21 = vpop.f32.mrf.mxu0  ;;  %v378_v49 = vadd.f32 %v3173_v50, %v167_v16 }
 0x23c   :  { %v2680_v26 = vpop.f32.mrf.mxu1  ;;  %2705 = vmatmul.mubr.msk.f32.vlgmr.msra.gmra.mxu0 %vm800_vm4, %v760_v19 }
 0x23d   :  { %v3202_v30 = vmax.f32 %v741_v23, 0.0  ;;  %2732 = vmatpush3.msra.mxu0 %v3152_v27  ;;  %v744_v35 = vadd.f32 %v2680_v26, %v556_v24  ;;  %v372_v27 = vadd.f32 %v3157_v41, %v161_v29  ;;  %v563_v25 = vadd.f32 %v3205_v33, %v375_v15  ;;  %v532_v32 = vpop.f32.mrf.mxu0 }
 0x23e   :  { %v660_v36 = vpop.f32.mrf.mxu1  ;;  %v377_v26 = vadd.f32 %v3177_v52, %v166_v20  ;;  %v566_v38 = vadd.f32 %v2661_v61, %v378_v49  ;;  %2789 = vmatprep.subr.msk.mxu0 %vm52_vm1, %v1398_v9 }
 0x23f   :  { %v743_v40 = vadd.f32 %v660_v36, %v555_v28  ;;  %2707 = vmatprep.mubr.msk.f32.mxu0 %vm800_vm4, %v3202_v30  ;;  %2762 = vmatprep.mubr.msk.f32.mxu1 %vm800_vm4, %v3202_v30  ;;  %v3224_v62 = vmax.f32 %v744_v35, 0.0  ;;  %v560_v48 = vadd.f32 %v3175_v51, %v372_v27  ;;  %v169_v28 = vld [vmem:[#allocation5 + $0x100] sm:$0xff]  ;;  %v171_v27 = vld [vmem:[#allocation5 + $0x110] sm:$0xff]  ;;  %v2667_v54 = vpop.f32.mrf.mxu0 }
 0x240   :  { %v2683_v37 = vpop.f32.mrf.mxu1  ;;  %2708 = vmatmul.mubr.msk.f32.gmra.mxu0 %vm800_vm4, %v3207_v34  ;;  %2763 = vmatmul.mubr.msk.f32.vlgmr.msra.gmra.mxu1 %vm800_vm4, %v3207_v34  ;;  %v380_v33 = vadd.f32 %v3179_v53, %v169_v28 }
 0x241   :  { %v3222_v58 = vmax.f32 %v743_v40, 0.0  ;;  %v746_v45 = vadd.f32 %v2683_v37, %v558_v43  ;;  %v565_v40 = vadd.f32 %v522_v10, %v377_v26  ;;  %v379_v43 = vadd.f32 %v3183_v57, %v168_v31 }
 0x242   :  { %v670_v41 = vpop.f32.mrf.mxu1  ;;  %v568_v53 = vadd.f32 %v2664_v21, %v380_v33 }
 0x243   :  { %v745_v1 = vadd.f32 %v670_v41, %v557_v39  ;;  %2710 = vmatprep.mubr.msk.f32.mxu0 %vm800_vm4, %v3222_v58  ;;  %2765 = vmatprep.mubr.msk.f32.mxu1 %vm800_vm4, %v3222_v58  ;;  %v3240_v11 = vmax.f32 %v746_v45, 0.0  ;;  %v170_v39 = vld [vmem:[#allocation5 + $0x108] sm:$0xff]  ;;  %v382_v41 = vadd.f32 %v3185_v59, %v171_v27  ;;  %v567_v57 = vadd.f32 %v532_v32, %v379_v43 }
 0x244   :  { %v2686_v2 = vpop.f32.mrf.mxu1  ;;  %2711 = vmatmul.mubr.msk.f32.gmra.mxu0 %vm800_vm4, %v3224_v62  ;;  %2766 = vmatmul.mubr.msk.f32.gmra.mxu1 %vm800_vm4, %v3224_v62 }
 0x245   :  { %v3238_v6 = vmax.f32 %v745_v1, 0.0  ;;  %v748_v51 = vadd.f32 %v2686_v2, %v560_v48  ;;  %v381_v48 = vadd.f32 %v3189_v0, %v170_v39  ;;  %v542_v2 = vpop.f32.mrf.mxu0  ;;  %v570_v10 = vadd.f32 %v2667_v54, %v382_v41  ;;  %v784_v39 = vld [vmem:[#allocation5 + $0x128] sm:$0xff] }
 0x246   :  { %v680_v44 = vpop.f32.mrf.mxu1 }
 0x247   :  { %v747_v12 = vadd.f32 %v680_v44, %v559_v3  ;;  %2713 = vmatprep.mubr.msk.f32.mxu0 %vm800_vm4, %v3238_v6  ;;  %2768 = vmatprep.mubr.msk.f32.mxu1 %vm800_vm4, %v3238_v6  ;;  %v3256_v22 = vmax.f32 %v748_v51, 0.0  ;;  %v569_v51 = vadd.f32 %v542_v2, %v381_v48  ;;  %v786_v2 = vld [vmem:[#allocation5 + $0x138] sm:$0xff] }
 0x248   :  { %v2689_v13 = vpop.f32.mrf.mxu1  ;;  %2714 = vmatmul.mubr.msk.f32.gmra.mxu0 %vm800_vm4, %v3240_v11  ;;  %2769 = vmatmul.mubr.msk.f32.gmra.mxu1 %vm800_vm4, %v3240_v11 }
 0x249   :  { %v3254_v17 = vmax.f32 %v747_v12, 0.0  ;;  %v750_v63 = vadd.f32 %v2689_v13, %v562_v56 }
 0x24a   :  { %v690_v47 = vpop.f32.mrf.mxu1 }
 0x24b   :  { %v749_v23 = vadd.f32 %v690_v47, %v561_v14  ;;  %2716 = vmatprep.mubr.msk.f32.mxu0 %vm800_vm4, %v3254_v17  ;;  %2771 = vmatprep.mubr.msk.f32.mxu1 %vm800_vm4, %v3254_v17  ;;  %v3272_v35 = vmax.f32 %v750_v63, 0.0 }
 0x24c   :  { %v2692_v24 = vpop.f32.mrf.mxu1  ;;  %2717 = vmatmul.mubr.msk.f32.gmra.mxu0 %vm800_vm4, %v3256_v22  ;;  %2772 = vmatmul.mubr.msk.f32.gmra.mxu1 %vm800_vm4, %v3256_v22 }
 0x24d   :  { %v3270_v29 = vmax.f32 %v749_v23, 0.0  ;;  %v752_v18 = vadd.f32 %v2692_v24, %v564_v8 }
 0x24e   :  { %v700_v50 = vpop.f32.mrf.mxu1 }
 0x24f   :  { %v751_v36 = vadd.f32 %v700_v50, %v563_v25  ;;  %2719 = vmatprep.mubr.msk.f32.mxu0 %vm800_vm4, %v3270_v29  ;;  %2774 = vmatprep.mubr.msk.f32.mxu1 %vm800_vm4, %v3270_v29  ;;  %v772_v55 = vmax.f32 %v752_v18, 0.0 }
 0x250   :  { %v2695_v52 = vpop.f32.mrf.mxu1  ;;  %2720 = vmatmul.mubr.msk.f32.gmra.mxu0 %vm800_vm4, %v3272_v35  ;;  %2775 = vmatmul.mubr.msk.f32.gmra.mxu1 %vm800_vm4, %v3272_v35 }
 0x251   :  { %v771_v37 = vmax.f32 %v751_v36, 0.0  ;;  %v754_v60 = vadd.f32 %v2695_v52, %v566_v38  ;;  %v782_v36 = vld [vmem:[#allocation5 + $0x118] sm:$0xff]  ;;  %v785_v52 = vld [vmem:[#allocation5 + $0x130] sm:$0xff] }
 0x252   :  { %v710_v45 = vpop.f32.mrf.mxu1 }
 0x253   :  { %v753_v61 = vadd.f32 %v710_v45, %v565_v40  ;;  %2722 = vmatprep.mubr.msk.f32.mxu0 %vm800_vm4, %v771_v37  ;;  %2777 = vmatprep.mubr.msk.f32.mxu1 %vm800_vm4, %v771_v37  ;;  %v774_v3 = vmax.f32 %v754_v60, 0.0 }
 0x254   :  { %v2698_v1 = vpop.f32.mrf.mxu1  ;;  %2723 = vmatmul.mubr.msk.f32.gmra.mxu0 %vm800_vm4, %v772_v55  ;;  %2778 = vmatmul.mubr.msk.f32.gmra.mxu1 %vm800_vm4, %v772_v55 }
 0x255   :  { %v773_v42 = vmax.f32 %v753_v61, 0.0  ;;  %v756_v4 = vadd.f32 %v2698_v1, %v568_v53  ;;  %v787_v61 = vld [vmem:[#allocation5 + $0x140] sm:$0xff] }
 0x256   :  { %v720_v5 = vpop.f32.mrf.mxu1 }
 0x257   :  { %v755_v7 = vadd.f32 %v720_v5, %v567_v57  ;;  %2725 = vmatprep.mubr.msk.f32.mxu0 %vm800_vm4, %v773_v42  ;;  %2780 = vmatprep.mubr.msk.f32.mxu1 %vm800_vm4, %v773_v42  ;;  %v776_v12 = vmax.f32 %v756_v4, 0.0 }
 0x258   :  { %v2701_v59 = vpop.f32.mrf.mxu1  ;;  %2726 = vmatmul.mubr.msk.f32.gmra.mxu0 %vm800_vm4, %v774_v3  ;;  %2781 = vmatmul.mubr.msk.f32.gmra.mxu1 %vm800_vm4, %v774_v3 }
 0x259   :  { %v775_v44 = vmax.f32 %v755_v7, 0.0  ;;  %v758_v0 = vadd.f32 %v2701_v59, %v570_v10  ;;  %v789_v10 = vld [vmem:[#allocation5 + $0x150] sm:$0xff] }
 0x25a   :  { %v730_v56 = vpop.f32.mrf.mxu1 }
 0x25b   :  { %v757_v46 = vadd.f32 %v730_v56, %v569_v51  ;;  %2728 = vmatprep.mubr.msk.f32.mxu0 %vm800_vm4, %v775_v44  ;;  %2783 = vmatprep.mubr.msk.f32.mxu1 %vm800_vm4, %v775_v44  ;;  %v778_v14 = vmax.f32 %v758_v0, 0.0 }
 0x25c   :  { %2729 = vmatmul.mubr.msk.f32.gmra.mxu0 %vm800_vm4, %v776_v12  ;;  %2784 = vmatmul.mubr.msk.f32.gmra.mxu1 %vm800_vm4, %v776_v12 }
 0x25d   :  { %v777_v13 = vmax.f32 %v757_v46, 0.0  ;;  %2733 = vmatprep.mubr.msk.f32.mxu0 %vm800_vm4, %v760_v19  ;;  %v1399_v19 = vld [vmem:[#allocation5 + $0x68] sm:$0xf] }
 0x25e   :  { %2815 = vmatprep.subr.msk.mxu1 %vm52_vm1, %v1399_v19  ;;  %v788_v46 = vld [vmem:[#allocation5 + $0x148] sm:$0xff] }
 0x25f   :  { %2786 = vmatprep.mubr.msk.f32.mxu1 %vm800_vm4, %v777_v13  ;;  %2816 = vmatpush3.msk.msra.mxu1 %vm52_vm1, %v1399_v19 }
 0x260   :  { %2734 = vmatmul.mubr.msk.f32.vlgmr.msra.gmra.mxu0 %vm800_vm4, %v3202_v30  ;;  %2787 = vmatmul.mubr.msk.f32.gmra.mxu1 %vm800_vm4, %v778_v14  ;;  %v3334_v30 = vld [vmem:[#allocation5 + $0x70] sm:$0xf] }
 0x261   :  { %2736 = vmatprep.mubr.msk.f32.mxu0 %vm800_vm4, %v3207_v34  ;;  %2790 = vmatpush3.msk.msra.mxu0 %vm52_vm1, %v1398_v9 }
 0x262   :  { %2841 = vmatprep.subr.msk.mxu0 %vm52_vm1, %v3334_v30 }
 0x264   :  { %2737 = vmatmul.mubr.msk.f32.gmra.mxu0 %vm800_vm4, %v3222_v58 }
 0x265   :  { %2739 = vmatprep.mubr.msk.f32.mxu0 %vm800_vm4, %v3224_v62 }
 0x268   :  { %2740 = vmatmul.mubr.msk.f32.gmra.mxu0 %vm800_vm4, %v3238_v6 }
 0x269   :  { %2742 = vmatprep.mubr.msk.f32.mxu0 %vm800_vm4, %v3240_v11 }
 0x26c   :  { %2743 = vmatmul.mubr.msk.f32.gmra.mxu0 %vm800_vm4, %v3254_v17 }
 0x26d   :  { %2745 = vmatprep.mubr.msk.f32.mxu0 %vm800_vm4, %v3256_v22 }
 0x270   :  { %2746 = vmatmul.mubr.msk.f32.gmra.mxu0 %vm800_vm4, %v3270_v29 }
 0x271   :  { %2748 = vmatprep.mubr.msk.f32.mxu0 %vm800_vm4, %v3272_v35  ;;  %v783_v35 = vld [vmem:[#allocation5 + $0x120] sm:$0xff] }
 0x274   :  { %2749 = vmatmul.mubr.msk.f32.gmra.mxu0 %vm800_vm4, %v771_v37 }
 0x275   :  { %2751 = vmatprep.mubr.msk.f32.mxu0 %vm800_vm4, %v772_v55 }
 0x278   :  { %2752 = vmatmul.mubr.msk.f32.gmra.mxu0 %vm800_vm4, %v773_v42 }
 0x279   :  { %2754 = vmatprep.mubr.msk.f32.mxu0 %vm800_vm4, %v774_v3 }
 0x27c   :  { %2755 = vmatmul.mubr.msk.f32.gmra.mxu0 %vm800_vm4, %v775_v44 }
 0x27d   :  { %2757 = vmatprep.mubr.msk.f32.mxu0 %vm800_vm4, %v776_v12 }
 0x280   :  { %2758 = vmatmul.mubr.msk.f32.gmra.mxu0 %vm800_vm4, %v777_v13 }
 0x2fc   :  { %v2706_v34 = vpop.f32.mrf.mxu0 }
 0x2fd   :  { %v1011_v33 = vadd.f32 %v2706_v34, %v783_v35  ;;  %v791_v34 = vld [vmem:[#allocation5 + $0x160] sm:$0xff] }
 0x2fe   :  { %v921_v58 = vpop.f32.mrf.mxu0 }
 0x2ff   :  { %v1010_v27 = vadd.f32 %v921_v58, %v782_v36 }
 0x300   :  { %v2709_v62 = vpop.f32.mrf.mxu0  ;;  %v2764_v6 = vpop.f32.mrf.mxu1 }
 0x301   :  { %v1013_v55 = vadd.f32 %v2709_v62, %v785_v52 }
 0x302   :  { %v931_v11 = vpop.f32.mrf.mxu0  ;;  %v1273_v15 = vpop.f32.mrf.mxu1 }
 0x303   :  { %v1012_v1 = vadd.f32 %v931_v11, %v784_v39  ;;  %v795_v39 = vld [vmem:[#allocation5 + $0x180] sm:$0xff] }
 0x304   :  { %v2712_v16 = vpop.f32.mrf.mxu0  ;;  %v2767_v20 = vpop.f32.mrf.mxu1 }
 0x305   :  { %v1015_v4 = vadd.f32 %v2712_v16, %v787_v61 }
 0x306   :  { %v941_v17 = vpop.f32.mrf.mxu0  ;;  %v1283_v63 = vpop.f32.mrf.mxu1 }
 0x307   :  { %v1014_v12 = vadd.f32 %v941_v17, %v786_v2 }
 0x308   :  { %v2715_v21 = vpop.f32.mrf.mxu0  ;;  %v2770_v8 = vpop.f32.mrf.mxu1 }
 0x309   :  { %v1017_v14 = vadd.f32 %v2715_v21, %v789_v10 }
 0x30a   :  { %v3338_v22 = vpop.f32.mrf.mxu0  ;;  %v1293_v25 = vpop.f32.mrf.mxu1 }
 0x30c   :  { %v3340_v47 = vpop.f32.mrf.mxu0  ;;  %v3352_v29 = vpop.f32.mrf.mxu1 }
 0x30e   :  { %v3342_v23 = vpop.f32.mrf.mxu0  ;;  %v3358_v18 = vpop.f32.mrf.mxu1 }
 0x310   :  { %v3344_v49 = vpop.f32.mrf.mxu0  ;;  %v3364_v40 = vpop.f32.mrf.mxu1 }
 0x312   :  { %v3346_v24 = vpop.f32.mrf.mxu0  ;;  %v3366_v53 = vpop.f32.mrf.mxu1 }
 0x314   :  { %v3348_v26 = vpop.f32.mrf.mxu0  ;;  %v3369_v59 = vpop.f32.mrf.mxu1 }
 0x316   :  { %v3350_v28 = vpop.f32.mrf.mxu0  ;;  %v1323_v58 = vpop.f32.mrf.mxu1 }
 0x318   :  { %v3354_v31 = vpop.f32.mrf.mxu0 }
 0x31a   :  { %v3356_v32 = vpop.f32.mrf.mxu0 }
 0x31c   :  { %v3360_v50 = vpop.f32.mrf.mxu0 }
 0x31e   :  { %v3362_v38 = vpop.f32.mrf.mxu0 }
 0x320   :  { %v2735_v43 = vpop.f32.mrf.mxu0 }
 0x321   :  { %v1187_v37 = vadd.f32 %v2735_v43, %v1011_v33 }
 0x322   :  { %v1097_v54 = vpop.f32.mrf.mxu0 }
 0x323   :  { %v1363_v60 = vadd.f32 %v2764_v6, %v1187_v37  ;;  %v1186_v45 = vadd.f32 %v1097_v54, %v1010_v27 }
 0x324   :  { %v2738_v41 = vpop.f32.mrf.mxu0 }
 0x325   :  { %v1381_v57 = vmax.f32 %v1363_v60, 0.0  ;;  %v1362_v48 = vadd.f32 %v1273_v15, %v1186_v45  ;;  %v1189_v42 = vadd.f32 %v2738_v41, %v1013_v55  ;;  %v1016_v15 = vadd.f32 %v3338_v22, %v788_v46 }
 0x326   :  { %v1107_v3 = vpop.f32.mrf.mxu0 }
 0x327   :  { %v1380_v5 = vmax.f32 %v1362_v48, 0.0  ;;  %v1188_v7 = vadd.f32 %v1107_v3, %v1012_v1  ;;  %2817 = vmatprep.mubr.msk.f32.mxu1 %vm1402_vm5, %v1381_v57  ;;  %v1365_v51 = vadd.f32 %v2767_v20, %v1189_v42  ;;  %v790_v20 = vld [vmem:[#allocation5 + $0x158] sm:$0xff] }
 0x328   :  { %v2741_v44 = vpop.f32.mrf.mxu0  ;;  %v1018_v52 = vadd.f32 %v3342_v23, %v790_v20 }
 0x329   :  { %v1364_v0 = vadd.f32 %v1283_v63, %v1188_v7  ;;  %v1191_v56 = vadd.f32 %v2741_v44, %v1015_v4  ;;  %2791 = vmatprep.mubr.msk.f32.mxu0 %vm1402_vm5, %v1380_v5  ;;  %v3377_v62 = vmax.f32 %v1365_v51, 0.0  ;;  %v796_v51 = vld [vmem:[#allocation5 + $0x188] sm:$0xff] }
 0x32a   :  { %v1117_v13 = vpop.f32.mrf.mxu0  ;;  %2792 = vmatmul.mubr.msk.f32.vlgmr.msra.gmra.mxu0 %vm1402_vm5, %v1381_v57 }
 0x32b   :  { %v3373_v9 = vmax.f32 %v1364_v0, 0.0  ;;  %v1190_v19 = vadd.f32 %v1117_v13, %v1014_v12  ;;  %2842 = vmatpush3.msk.msra.mxu0 %vm52_vm1, %v3334_v30  ;;  %v1367_v6 = vadd.f32 %v2770_v8, %v1191_v56  ;;  %v1019_v30 = vadd.f32 %v3340_v47, %v791_v34  ;;  %v793_v8 = vld [vmem:[#allocation5 + $0x170] sm:$0xff]  ;;  %v792_v47 = vld [vmem:[#allocation5 + $0x168] sm:$0xff]  ;;  %v798_v34 = vld [vmem:[#allocation5 + $0x198] sm:$0xff] }
 0x32c   :  { %v2744_v11 = vpop.f32.mrf.mxu0  ;;  %v1020_v61 = vadd.f32 %v3346_v24, %v792_v47  ;;  %v1024_v13 = vadd.f32 %v3356_v32, %v796_v51  ;;  %v1026_v32 = vadd.f32 %v3362_v38, %v798_v34  ;;  %v1980_v47 = vld [vmem:[#allocation5 + $0x208] sm:$0xff]  ;;  %vm2218_vm1 = vcmask 850944  }
 0x32d   :  { %v1366_v16 = vadd.f32 %v1293_v25, %v1190_v19  ;;  %v1193_v17 = vadd.f32 %v2744_v11, %v1017_v14  ;;  %2794 = vmatprep.mubr.msk.f32.mxu0 %vm1402_vm5, %v3373_v9  ;;  %2818 = vmatmul.mubr.msk.f32.vlgmr.msra.gmra.mxu1 %vm1402_vm5, %v3373_v9  ;;  %v2782_v25 = vpop.f32.mrf.mxu1  ;;  %v3391_v35 = vmax.f32 %v1367_v6, 0.0 }
 0x32e   :  { %v1127_v21 = vpop.f32.mrf.mxu0  ;;  %2795 = vmatmul.mubr.msk.f32.gmra.mxu0 %vm1402_vm5, %v3377_v62  ;;  %2820 = vmatprep.mubr.msk.f32.mxu1 %vm1402_vm5, %v3377_v62 }
 0x32f   :  { %v3389_v63 = vmax.f32 %v1366_v16, 0.0  ;;  %v1192_v22 = vadd.f32 %v1127_v21, %v1016_v15  ;;  %v1369_v36 = vadd.f32 %v3352_v29, %v1193_v17  ;;  %v1021_v29 = vadd.f32 %v3344_v49, %v793_v8  ;;  %v1333_v54 = vpop.f32.mrf.mxu1  ;;  %v794_v49 = vld [vmem:[#allocation5 + $0x178] sm:$0xff] }
 0x330   :  { %v2747_v33 = vpop.f32.mrf.mxu0  ;;  %v1022_v5 = vadd.f32 %v3350_v28, %v794_v49 }
 0x331   :  { %v1368_v43 = vadd.f32 %v3358_v18, %v1192_v22  ;;  %v1195_v27 = vadd.f32 %v2747_v33, %v1019_v30  ;;  %2797 = vmatprep.mubr.msk.f32.mxu0 %vm1402_vm5, %v3389_v63  ;;  %2821 = vmatmul.mubr.msk.f32.gmra.mxu1 %vm1402_vm5, %v3389_v63  ;;  %v3407_v55 = vmax.f32 %v1369_v36, 0.0  ;;  %v2785_v42 = vpop.f32.mrf.mxu1 }
 0x332   :  { %v1137_v37 = vpop.f32.mrf.mxu0  ;;  %2798 = vmatmul.mubr.msk.f32.gmra.mxu0 %vm1402_vm5, %v3391_v35  ;;  %2823 = vmatprep.mubr.msk.f32.mxu1 %vm1402_vm5, %v3391_v35 }
 0x333   :  { %v3405_v23 = vmax.f32 %v1368_v43, 0.0  ;;  %v1194_v18 = vadd.f32 %v1137_v37, %v1018_v52  ;;  %v1371_v60 = vadd.f32 %v3364_v40, %v1195_v27  ;;  %v1023_v40 = vadd.f32 %v3348_v26, %v795_v39  ;;  %v1984_v52 = vld [vmem:[#allocation5 + $0x228] sm:$0xff]  ;;  %v1982_v43 = vld [vmem:[#allocation5 + $0x218] sm:$0xff]  ;;  %v1981_v27 = vld [vmem:[#allocation5 + $0x210] sm:$0xff] }
 0x334   :  { %v2750_v45 = vpop.f32.mrf.mxu0  ;;  %2867 = vmatprep.subr.mxu1 %v1984_v52  ;;  %v1979_v37 = vld [vmem:[#allocation5 + $0x200] sm:$0xff] }
 0x335   :  { %v1370_v41 = vadd.f32 %v3366_v53, %v1194_v18  ;;  %v1197_v1 = vadd.f32 %v2750_v45, %v1021_v29  ;;  %2800 = vmatprep.mubr.msk.f32.mxu0 %vm1402_vm5, %v3405_v23  ;;  %2824 = vmatmul.mubr.msk.f32.gmra.mxu1 %vm1402_vm5, %v3405_v23  ;;  %v797_v53 = vld [vmem:[#allocation5 + $0x190] sm:$0xff]  ;;  %v1389_v2 = vmax.f32 %v1371_v60, 0.0  ;;  %v1978_v29 = vld [vmem:[#allocation5 + $0x1f8] sm:$0xff]  ;;  %v1976_v18 = vld [vmem:[#allocation5 + $0x1e8] sm:$0xff] }
 0x336   :  { %v1147_v57 = vpop.f32.mrf.mxu0  ;;  %2801 = vmatmul.mubr.msk.f32.gmra.mxu0 %vm1402_vm5, %v3407_v55  ;;  %2826 = vmatprep.mubr.msk.f32.mxu1 %vm1402_vm5, %v3407_v55  ;;  %v1025_v26 = vadd.f32 %v3354_v31, %v797_v53  ;;  %v1975_v39 = vld [vmem:[#allocation5 + $0x1e0] sm:$0xff]  ;;  %v1972_v60 = vld [vmem:[#allocation5 + $0x1c8] sm:$0xff] }
 0x337   :  { %v1388_v24 = vmax.f32 %v1370_v41, 0.0  ;;  %v1196_v48 = vadd.f32 %v1147_v57, %v1020_v61  ;;  %v1373_v3 = vadd.f32 %v3369_v59, %v1197_v1  ;;  %v1343_v59 = vpop.f32.mrf.mxu1  ;;  %2868 = vmatpush3.msra.mxu1 %v1984_v52  ;;  %v1971_v45 = vld [vmem:[#allocation5 + $0x1c0] sm:$0xff]  ;;  %v1970_v61 = vld [vmem:[#allocation5 + $0x1b8] sm:$0xff]  ;;  %v1969_v41 = vld [vmem:[#allocation5 + $0x1b0] sm:$0xff] }
 0x338   :  { %v2753_v4 = vpop.f32.mrf.mxu0 }
 0x339   :  { %v1372_v7 = vadd.f32 %v1323_v58, %v1196_v48  ;;  %v1199_v10 = vadd.f32 %v2753_v4, %v1023_v40  ;;  %2803 = vmatprep.mubr.msk.f32.mxu0 %vm1402_vm5, %v1388_v24  ;;  %2827 = vmatmul.mubr.msk.f32.gmra.mxu1 %vm1402_vm5, %v1388_v24  ;;  %v1391_v56 = vmax.f32 %v1373_v3, 0.0  ;;  %v2788_v11 = vpop.f32.mrf.mxu1 }
 0x33a   :  { %v1157_v44 = vpop.f32.mrf.mxu0  ;;  %2804 = vmatmul.mubr.msk.f32.gmra.mxu0 %vm1402_vm5, %v1389_v2  ;;  %2829 = vmatprep.mubr.msk.f32.mxu1 %vm1402_vm5, %v1389_v2 }
 0x33b   :  { %v1390_v12 = vmax.f32 %v1372_v7, 0.0  ;;  %v1198_v0 = vadd.f32 %v1157_v44, %v1022_v5  ;;  %v1375_v46 = vadd.f32 %v2782_v25, %v1199_v10  ;;  %v1353_v8 = vpop.f32.mrf.mxu1 }
 0x33c   :  { %v2756_v28 = vpop.f32.mrf.mxu0 }
 0x33d   :  { %v1374_v14 = vadd.f32 %v1333_v54, %v1198_v0  ;;  %v1201_v19 = vadd.f32 %v2756_v28, %v1025_v26  ;;  %2806 = vmatprep.mubr.msk.f32.mxu0 %vm1402_vm5, %v1390_v12  ;;  %2830 = vmatmul.mubr.msk.f32.gmra.mxu1 %vm1402_vm5, %v1390_v12  ;;  %v1393_v15 = vmax.f32 %v1375_v46, 0.0  ;;  %v1974_v54 = vld [vmem:[#allocation5 + $0x1d8] sm:$0xff] }
 0x33e   :  { %v1167_v58 = vpop.f32.mrf.mxu0  ;;  %2807 = vmatmul.mubr.msk.f32.gmra.mxu0 %vm1402_vm5, %v1391_v56  ;;  %2832 = vmatprep.mubr.msk.f32.mxu1 %vm1402_vm5, %v1391_v56 }
 0x33f   :  { %v1392_v31 = vmax.f32 %v1374_v14, 0.0  ;;  %v1200_v6 = vadd.f32 %v1167_v58, %v1024_v13  ;;  %v1377_v16 = vadd.f32 %v2785_v42, %v1201_v19 }
 0x340   :  { %v2759_v17 = vpop.f32.mrf.mxu0 }
 0x341   :  { %v1376_v20 = vadd.f32 %v1343_v59, %v1200_v6  ;;  %2809 = vmatprep.mubr.msk.f32.mxu0 %vm1402_vm5, %v1392_v31  ;;  %2833 = vmatmul.mubr.msk.f32.gmra.mxu1 %vm1402_vm5, %v1392_v31  ;;  %v1395_v25 = vmax.f32 %v1377_v16, 0.0 }
 0x342   :  { %v1177_v21 = vpop.f32.mrf.mxu0  ;;  %2810 = vmatmul.mubr.msk.f32.gmra.mxu0 %vm1402_vm5, %v1393_v15  ;;  %2835 = vmatprep.mubr.msk.f32.mxu1 %vm1402_vm5, %v1393_v15 }
 0x343   :  { %v1394_v30 = vmax.f32 %v1376_v20, 0.0  ;;  %v1202_v22 = vadd.f32 %v1177_v21, %v1026_v32 }
 0x345   :  { %v1378_v36 = vadd.f32 %v1353_v8, %v1202_v22  ;;  %2812 = vmatprep.mubr.msk.f32.mxu0 %vm1402_vm5, %v1394_v30  ;;  %2836 = vmatmul.mubr.msk.f32.gmra.mxu1 %vm1402_vm5, %v1394_v30 }
 0x346   :  { %2813 = vmatmul.mubr.msk.f32.gmra.mxu0 %vm1402_vm5, %v1395_v25  ;;  %2838 = vmatprep.mubr.msk.f32.mxu1 %vm1402_vm5, %v1395_v25 }
 0x347   :  { %v1396_v38 = vmax.f32 %v1378_v36, 0.0  ;;  %2843 = vmatprep.mubr.msk.f32.mxu0 %vm1402_vm5, %v3373_v9  ;;  %v799_v9 = vld [vmem:[#allocation5 + $0x1a0] sm:$0xff] }
 0x349   :  { %2839 = vmatmul.mubr.msk.f32.gmra.mxu1 %vm1402_vm5, %v1396_v38 }
 0x34a   :  { %2844 = vmatmul.mubr.msk.f32.vlgmr.msra.gmra.mxu0 %vm1402_vm5, %v3377_v62  ;;  %v1027_v62 = vadd.f32 %v3360_v50, %v799_v9  ;;  %v1983_v50 = vld [vmem:[#allocation5 + $0x220] sm:$0xff] }
 0x34b   :  { %2846 = vmatprep.mubr.msk.f32.mxu0 %vm1402_vm5, %v3389_v63  ;;  %2869 = vmatprep.subr.mxu1 %v1983_v50 }
 0x34c   :  { %v1203_v63 = vadd.f32 %v2759_v17, %v1027_v62  ;;  %2870 = vmatpush3.msra.mxu1 %v1983_v50 }
 0x34d   :  { %2871 = vmatprep.subr.mxu1 %v1982_v43 }
 0x34e   :  { %2847 = vmatmul.mubr.msk.f32.gmra.mxu0 %vm1402_vm5, %v3391_v35  ;;  %v1379_v35 = vadd.f32 %v2788_v11, %v1203_v63  ;;  %2872 = vmatpush3.msra.mxu1 %v1982_v43 }
 0x34f   :  { %2849 = vmatprep.mubr.msk.f32.mxu0 %vm1402_vm5, %v3405_v23  ;;  %2873 = vmatprep.subr.mxu1 %v1981_v27  ;;  %v1977_v23 = vld [vmem:[#allocation5 + $0x1f0] sm:$0xff] }
 0x350   :  { %v1397_v33 = vmax.f32 %v1379_v35, 0.0  ;;  %2874 = vmatpush3.msra.mxu1 %v1981_v27 }
 0x351   :  { %2875 = vmatprep.subr.mxu1 %v1980_v47 }
 0x352   :  { %2850 = vmatmul.mubr.msk.f32.gmra.mxu0 %vm1402_vm5, %v3407_v55  ;;  %2876 = vmatpush3.msra.mxu1 %v1980_v47  ;;  %v1973_v55 = vld [vmem:[#allocation5 + $0x1d0] sm:$0xff] }
 0x353   :  { %2852 = vmatprep.mubr.msk.f32.mxu0 %vm1402_vm5, %v1388_v24  ;;  %2877 = vmatprep.subr.mxu1 %v1979_v37 }
 0x354   :  { %2878 = vmatpush3.msra.mxu1 %v1979_v37 }
 0x355   :  { %2879 = vmatprep.subr.mxu1 %v1978_v29 }
 0x356   :  { %2853 = vmatmul.mubr.msk.f32.gmra.mxu0 %vm1402_vm5, %v1389_v2  ;;  %2880 = vmatpush3.msra.mxu1 %v1978_v29 }
 0x357   :  { %2855 = vmatprep.mubr.msk.f32.mxu0 %vm1402_vm5, %v1390_v12  ;;  %2881 = vmatprep.subr.mxu1 %v1977_v23 }
 0x358   :  { %2882 = vmatpush3.msra.mxu1 %v1977_v23 }
 0x359   :  { %2883 = vmatprep.subr.mxu1 %v1976_v18 }
 0x35a   :  { %2856 = vmatmul.mubr.msk.f32.gmra.mxu0 %vm1402_vm5, %v1391_v56  ;;  %2884 = vmatpush3.msra.mxu1 %v1976_v18  ;;  %v3468_v56 = vld [vmem:[#allocation5 + $0x1a8] ss:$0 sm:$0xff] }
 0x35b   :  { %2858 = vmatprep.mubr.msk.f32.mxu0 %vm1402_vm5, %v1392_v31  ;;  %2885 = vmatprep.subr.mxu1 %v1975_v39 }
 0x35c   :  { %2886 = vmatpush3.msra.mxu1 %v1975_v39 }
 0x35d   :  { %2887 = vmatprep.subr.mxu1 %v1974_v54 }
 0x35e   :  { %2859 = vmatmul.mubr.msk.f32.gmra.mxu0 %vm1402_vm5, %v1393_v15  ;;  %2888 = vmatpush3.msra.mxu1 %v1974_v54 }
 0x35f   :  { %2861 = vmatprep.mubr.msk.f32.mxu0 %vm1402_vm5, %v1394_v30  ;;  %2889 = vmatprep.subr.mxu1 %v1973_v55 }
 0x360   :  { %2890 = vmatpush3.msra.mxu1 %v1973_v55 }
 0x361   :  { %2891 = vmatprep.subr.mxu1 %v1972_v60 }
 0x362   :  { %2862 = vmatmul.mubr.msk.f32.gmra.mxu0 %vm1402_vm5, %v1395_v25  ;;  %2892 = vmatpush3.msra.mxu1 %v1972_v60 }
 0x363   :  { %2864 = vmatprep.mubr.msk.f32.mxu0 %vm1402_vm5, %v1396_v38  ;;  %2893 = vmatprep.subr.mxu1 %v1971_v45 }
 0x364   :  { %2894 = vmatpush3.msra.mxu1 %v1971_v45 }
 0x365   :  { %2895 = vmatprep.subr.mxu1 %v1970_v61 }
 0x366   :  { %2865 = vmatmul.mubr.msk.f32.gmra.mxu0 %vm1402_vm5, %v1397_v33  ;;  %2896 = vmatpush3.msra.mxu1 %v1970_v61 }
 0x367   :  { %2897 = vmatprep.subr.mxu1 %v1969_v41 }
 0x368   :  { %2898 = vmatpush3.msra.mxu1 %v1969_v41 }
 0x3ea   :  { %v2793_v1 = vpop.f32.mrf.mxu0 }
 0x3eb   :  { %v1604_v13 = vadd.f32 %v2793_v1, %v3468_v56 }
 0x3ec   :  { %v1520_v49 = vpop.f32.mrf.mxu0 }
 0x3ed   :  { %v2819_v57 = vpop.f32.mrf.mxu1  ;;  %v1603_v19 = vadd.f32 %v3468_v56, %v1520_v49 }
 0x3ee   :  { %v2796_v40 = vpop.f32.mrf.mxu0  ;;  %v1771_v31 = vadd.f32 %v2819_v57, %v1604_v13 }
 0x3ef   :  { %v1691_v24 = vpop.f32.mrf.mxu1  ;;  %v1606_v6 = vadd.f32 %v2796_v40, %v3468_v56 }
 0x3f0   :  { %v1530_v48 = vpop.f32.mrf.mxu0  ;;  %v1770_v15 = vadd.f32 %v1691_v24, %v1603_v19 }
 0x3f1   :  { %v2822_v53 = vpop.f32.mrf.mxu1  ;;  %v1605_v16 = vadd.f32 %v3468_v56, %v1530_v48 }
 0x3f2   :  { %v2799_v42 = vpop.f32.mrf.mxu0  ;;  %v1773_v30 = vadd.f32 %v2822_v53, %v1606_v6 }
 0x3f3   :  { %v1701_v2 = vpop.f32.mrf.mxu1  ;;  %v1608_v22 = vadd.f32 %v2799_v42, %v3468_v56 }
 0x3f4   :  { %v1540_v3 = vpop.f32.mrf.mxu0  ;;  %v1772_v25 = vadd.f32 %v1701_v2, %v1605_v16 }
 0x3f5   :  { %v2825_v5 = vpop.f32.mrf.mxu1  ;;  %v1607_v36 = vadd.f32 %v3468_v56, %v1540_v3 }
 0x3f6   :  { %v2802_v4 = vpop.f32.mrf.mxu0  ;;  %v1775_v52 = vadd.f32 %v2825_v5, %v1608_v22 }
 0x3f7   :  { %v1711_v51 = vpop.f32.mrf.mxu1  ;;  %v1610_v50 = vadd.f32 %v2802_v4, %v3468_v56 }
 0x3f8   :  { %v1550_v7 = vpop.f32.mrf.mxu0  ;;  %v1774_v27 = vadd.f32 %v1711_v51, %v1607_v36 }
 0x3f9   :  { %v2828_v12 = vpop.f32.mrf.mxu1  ;;  %v1609_v47 = vadd.f32 %v3468_v56, %v1550_v7 }
 0x3fa   :  { %v2805_v10 = vpop.f32.mrf.mxu0  ;;  %v1777_v55 = vadd.f32 %v2828_v12, %v1610_v50 }
 0x3fb   :  { %v1721_v46 = vpop.f32.mrf.mxu1  ;;  %v1612_v60 = vadd.f32 %v2805_v10, %v3468_v56 }
 0x3fc   :  { %v1560_v44 = vpop.f32.mrf.mxu0  ;;  %v1776_v61 = vadd.f32 %v1721_v46, %v1609_v47 }
 0x3fd   :  { %v2831_v34 = vpop.f32.mrf.mxu1  ;;  %v1611_v41 = vadd.f32 %v3468_v56, %v1560_v44 }
 0x3fe   :  { %v2808_v26 = vpop.f32.mrf.mxu0  ;;  %v1779_v53 = vadd.f32 %v2831_v34, %v1612_v60 }
 0x3ff   :  { %v1731_v17 = vpop.f32.mrf.mxu1  ;;  %v1614_v42 = vadd.f32 %v2808_v26, %v3468_v56 }
 0x400   :  { %v1570_v0 = vpop.f32.mrf.mxu0  ;;  %v1778_v3 = vadd.f32 %v1731_v17, %v1611_v41 }
 0x401   :  { %v2834_v9 = vpop.f32.mrf.mxu1  ;;  %v1613_v4 = vadd.f32 %v3468_v56, %v1570_v0 }
 0x402   :  { %v3466_v59 = vpop.f32.mrf.mxu0  ;;  %v1781_v46 = vadd.f32 %v2834_v9, %v1614_v42 }
 0x403   :  { %v1741_v29 = vpop.f32.mrf.mxu1  ;;  %v1616_v13 = vadd.f32 %v3466_v59, %v3468_v56 }
 0x404   :  { %v3470_v28 = vpop.f32.mrf.mxu0  ;;  %v1780_v34 = vadd.f32 %v1741_v29, %v1613_v4 }
 0x405   :  { %v2837_v49 = vpop.f32.mrf.mxu1  ;;  %v1615_v26 = vadd.f32 %v3468_v56, %v3470_v28 }
 0x406   :  { %v3473_v14 = vpop.f32.mrf.mxu0  ;;  %v1783_v17 = vadd.f32 %v2837_v49, %v1616_v13 }
 0x407   :  { %v1751_v7 = vpop.f32.mrf.mxu1 }
 0x408   :  { %v3476_v58 = vpop.f32.mrf.mxu0  ;;  %v1782_v59 = vadd.f32 %v1751_v7, %v1615_v26 }
 0x409   :  { %v2840_v6 = vpop.f32.mrf.mxu1 }
 0x40a   :  { %v2845_v11 = vpop.f32.mrf.mxu0 }
 0x40b   :  { %v1938_v32 = vadd.f32 %v2845_v11, %v1771_v31  ;;  %v1761_v22 = vpop.f32.mrf.mxu1 }
 0x40c   :  { %v1858_v20 = vpop.f32.mrf.mxu0 }
 0x40d   :  { %v1937_v21 = vadd.f32 %v1858_v20, %v1770_v15  ;;  %v1954_v62 = vmax.f32 %v1938_v32, 0.0  ;;  %v1618_v32 = vadd.f32 %v3473_v14, %v3468_v56 }
 0x40e   :  { %v2848_v8 = vpop.f32.mrf.mxu0 }
 0x40f   :  { %v1953_v38 = vmax.f32 %v1937_v21, 0.0  ;;  %v1940_v63 = vadd.f32 %v2848_v8, %v1773_v30  ;;  %v1617_v21 = vadd.f32 %v3468_v56, %v3476_v58  ;;  %v2383_v58 = vld [vmem:[#allocation5 + $0x230] ss:$0 sm:$0xff] }
 0x410   :  { %v1868_v35 = vpop.f32.mrf.mxu0 }
 0x411   :  { %v1939_v33 = vadd.f32 %v1868_v35, %v1772_v25  ;;  %2899 = vmatprep.mubr.f32.mxu1 %v1953_v38  ;;  %v1956_v23 = vmax.f32 %v1940_v63, 0.0  ;;  %v1785_v38 = vadd.f32 %v2840_v6, %v1618_v32 }
 0x412   :  { %v2851_v43 = vpop.f32.mrf.mxu0  ;;  %2900 = vmatmul.mubr.f32.vlgmr.msra.gmra.mxu1 %v1954_v62  ;;  %v1784_v62 = vadd.f32 %v1761_v22, %v1617_v21 }
 0x413   :  { %v1955_v37 = vmax.f32 %v1939_v33, 0.0  ;;  %v1942_v18 = vadd.f32 %v2851_v43, %v1775_v52 }
 0x414   :  { %v1878_v39 = vpop.f32.mrf.mxu0 }
 0x415   :  { %v1941_v54 = vadd.f32 %v1878_v39, %v1774_v27  ;;  %2902 = vmatprep.mubr.f32.mxu1 %v1955_v37  ;;  %v1958_v57 = vmax.f32 %v1942_v18, 0.0 }
 0x416   :  { %v2854_v45 = vpop.f32.mrf.mxu0  ;;  %2903 = vmatmul.mubr.f32.gmra.mxu1 %v1956_v23 }
 0x417   :  { %v1957_v1 = vmax.f32 %v1941_v54, 0.0  ;;  %v1944_v40 = vadd.f32 %v2854_v45, %v1777_v55 }
 0x418   :  { %v1888_v24 = vpop.f32.mrf.mxu0 }
 0x419   :  { %v1943_v48 = vadd.f32 %v1888_v24, %v1776_v61  ;;  %2905 = vmatprep.mubr.f32.mxu1 %v1957_v1  ;;  %v1960_v10 = vmax.f32 %v1944_v40, 0.0 }
 0x41a   :  { %v2857_v2 = vpop.f32.mrf.mxu0  ;;  %2906 = vmatmul.mubr.f32.gmra.mxu1 %v1958_v57 }
 0x41b   :  { %v1959_v5 = vmax.f32 %v1943_v48, 0.0  ;;  %v1946_v51 = vadd.f32 %v2857_v2, %v1779_v53 }
 0x41c   :  { %v1898_v44 = vpop.f32.mrf.mxu0 }
 0x41d   :  { %v1945_v12 = vadd.f32 %v1898_v44, %v1778_v3  ;;  %2908 = vmatprep.mubr.f32.mxu1 %v1959_v5  ;;  %v1962_v0 = vmax.f32 %v1946_v51, 0.0 }
 0x41e   :  { %v2860_v19 = vpop.f32.mrf.mxu0  ;;  %2909 = vmatmul.mubr.f32.gmra.mxu1 %v1960_v10 }
 0x41f   :  { %v1961_v31 = vmax.f32 %v1945_v12, 0.0  ;;  %v1948_v11 = vadd.f32 %v2860_v19, %v1781_v46 }
 0x420   :  { %v1908_v15 = vpop.f32.mrf.mxu0 }
 0x421   :  { %v1947_v16 = vadd.f32 %v1908_v15, %v1780_v34  ;;  %2911 = vmatprep.mubr.f32.mxu1 %v1961_v31  ;;  %v1964_v28 = vmax.f32 %v1948_v11, 0.0 }
 0x422   :  { %v2863_v20 = vpop.f32.mrf.mxu0  ;;  %2912 = vmatmul.mubr.f32.gmra.mxu1 %v1962_v0 }
 0x423   :  { %v1963_v30 = vmax.f32 %v1947_v16, 0.0  ;;  %v1950_v8 = vadd.f32 %v2863_v20, %v1783_v17 }
 0x424   :  { %v1918_v25 = vpop.f32.mrf.mxu0 }
 0x425   :  { %v1949_v36 = vadd.f32 %v1918_v25, %v1782_v59  ;;  %2914 = vmatprep.mubr.f32.mxu1 %v1963_v30  ;;  %v1966_v35 = vmax.f32 %v1950_v8, 0.0 }
 0x426   :  { %v2866_v9 = vpop.f32.mrf.mxu0  ;;  %2915 = vmatmul.mubr.f32.gmra.mxu1 %v1964_v28 }
 0x427   :  { %v1965_v63 = vmax.f32 %v1949_v36, 0.0  ;;  %v1952_v14 = vadd.f32 %v2866_v9, %v1785_v38 }
 0x428   :  { %v1928_v33 = vpop.f32.mrf.mxu0 }
 0x429   :  { %v1951_v52 = vadd.f32 %v1928_v33, %v1784_v62  ;;  %2917 = vmatprep.mubr.f32.mxu1 %v1965_v63  ;;  %v1968_v56 = vmax.f32 %v1952_v14, 0.0 }
 0x42a   :  { %2918 = vmatmul.mubr.f32.gmra.mxu1 %v1966_v35 }
 0x42b   :  { %v1967_v50 = vmax.f32 %v1951_v52, 0.0 }
 0x42d   :  { %2920 = vmatprep.mubr.f32.mxu1 %v1967_v50 }
 0x42e   :  { %2921 = vmatmul.mubr.f32.gmra.mxu1 %v1968_v56 }
 0x4d2   :  { %v2901_v43 = vpop.f32.mrf.mxu1 }
 0x4d3   :  { %v2062_v27 = vadd.f32 %v2901_v43, %v2383_v58 }
 0x4d4   :  { %v2056_v47 = vpop.f32.mrf.mxu1 }
 0x4d5   :  { %v2057_v37 = vadd.f32 %v2383_v58, %v2056_v47  ;;  %2136 = vrot.lane.b32.xlu1 %v2062_v27, %s3018_s18 }
 0x4d6   :  { %v2904_v29 = vpop.f32.mrf.mxu1 }
 0x4d7   :  { %v2072_v23 = vadd.f32 %v2904_v29, %v2383_v58 }
 0x4d8   :  { %v2066_v18 = vpop.f32.mrf.mxu1 }
 0x4d9   :  { %v2067_v39 = vadd.f32 %v2383_v58, %v2066_v18  ;;  %2144 = vrot.lane.b32.xlu1 %v2072_v23, %s3030_s28 }
 0x4da   :  { %v2907_v54 = vpop.f32.mrf.mxu1 }
 0x4db   :  { %v2082_v55 = vadd.f32 %v2907_v54, %v2383_v58  ;;  %2140 = vrot.lane.b32.xlu0 %v2067_v39, %s3031_s29 }
 0x4dc   :  { %v2076_v60 = vpop.f32.mrf.mxu1 }
 0x4dd   :  { %v2077_v45 = vadd.f32 %v2383_v58, %v2076_v60  ;;  %2152 = vrot.lane.b32.xlu1 %v2082_v55, %s3032_s30 }
 0x4de   :  { %v2910_v61 = vpop.f32.mrf.mxu1 }
 0x4df   :  { %v2092_v41 = vadd.f32 %v2910_v61, %v2383_v58  ;;  %2148 = vrot.lane.b32.xlu0 %v2077_v45, %s3027_s25 }
 0x4e0   :  { %v2086_v1 = vpop.f32.mrf.mxu1 }
 0x4e1   :  { %v2087_v49 = vadd.f32 %v2383_v58, %v2086_v1  ;;  %2160 = vrot.lane.b32.xlu1 %v2092_v41, %s3025_s23 }
 0x4e2   :  { %v2913_v57 = vpop.f32.mrf.mxu1 }
 0x4e3   :  { %v2102_v40 = vadd.f32 %v2913_v57, %v2383_v58  ;;  %2156 = vrot.lane.b32.xlu0 %v2087_v49, %s3033_s3 }
 0x4e4   :  { %v2096_v24 = vpop.f32.mrf.mxu1 }
 0x4e5   :  { %v2097_v48 = vadd.f32 %v2383_v58, %v2096_v24  ;;  %2168 = vrot.lane.b32.xlu1 %v2102_v40, %s3034_s4 }
 0x4e6   :  { %v2916_v53 = vpop.f32.mrf.mxu1 }
 0x4e7   :  { %v2112_v42 = vadd.f32 %v2916_v53, %v2383_v58  ;;  %2164 = vrot.lane.b32.xlu0 %v2097_v48, %s3035_s5 }
 0x4e8   :  { %v2106_v2 = vpop.f32.mrf.mxu1 }
 0x4e9   :  { %v2107_v3 = vadd.f32 %v2383_v58, %v2106_v2  ;;  %2176 = vrot.lane.b32.xlu1 %v2112_v42, %s3036_s6 }
 0x4ea   :  { %v2919_v4 = vpop.f32.mrf.mxu1 }
 0x4eb   :  { %v2122_v5 = vadd.f32 %v2919_v4, %v2383_v58  ;;  %2172 = vrot.lane.b32.xlu0 %v2107_v3, %s3023_s21 }
 0x4ec   :  { %v2116_v7 = vpop.f32.mrf.mxu1 }
 0x4ed   :  { %v2117_v10 = vadd.f32 %v2383_v58, %v2116_v7  ;;  %2184 = vrot.lane.b32.xlu1 %v2122_v5, %s3024_s22 }
 0x4ee   :  { %v2922_v51 = vpop.f32.mrf.mxu1 }
 0x4ef   :  { %v2132_v44 = vadd.f32 %v2922_v51, %v2383_v58  ;;  %2180 = vrot.lane.b32.xlu0 %v2117_v10, %s3037_s7 }
 0x4f0   :  { %v2126_v12 = vpop.f32.mrf.mxu1 }
 0x4f1   :  { %v2127_v46 = vadd.f32 %v2383_v58, %v2126_v12  ;;  %2192 = vrot.lane.b32.xlu1 %v2132_v44, %s3038_s8 }
 0x4f3   :  { %2188 = vrot.lane.b32.xlu0 %v2127_v46, %s3039_s9 }
 0x547   :  { %v2137_v13 = vpop.permute.xlu1 %2136 }
 0x548   :  { %v2195_v34 = vsel %vm800_vm4, %v2057_v37, %v2137_v13 }
 0x54b   :  { %v2145_v19 = vpop.permute.xlu1 %2144 }
 0x54d   :  { %v2141_v26 = vpop.permute.xlu0 %2140 }
 0x54e   :  { %v2197_v31 = vsel %vm2196_vm6, %v2195_v34, %v2141_v26 }
 0x54f   :  { %v2153_v6 = vpop.permute.xlu1 %2152  ;;  %v2199_v11 = vsel %vm2198_vm7, %v2197_v31, %v2145_v19 }
 0x551   :  { %v2149_v0 = vpop.permute.xlu0 %2148 }
 0x552   :  { %v2201_v15 = vsel %vm2200_vm8, %v2199_v11, %v2149_v0 }
 0x553   :  { %v2161_v16 = vpop.permute.xlu1 %2160  ;;  %v2203_v32 = vsel %vm2202_vm9, %v2201_v15, %v2153_v6 }
 0x555   :  { %v2157_v17 = vpop.permute.xlu0 %2156 }
 0x556   :  { %v2205_v20 = vsel %vm2204_vm10, %v2203_v32, %v2157_v17 }
 0x557   :  { %v2169_v59 = vpop.permute.xlu1 %2168  ;;  %v2207_v30 = vsel %vm2206_vm11, %v2205_v20, %v2161_v16 }
 0x559   :  { %v2165_v21 = vpop.permute.xlu0 %2164 }
 0x55a   :  { %v2209_v22 = vsel %vm2208_vm12, %v2207_v30, %v2165_v21 }
 0x55b   :  { %v2177_v28 = vpop.permute.xlu1 %2176  ;;  %v2211_v25 = vsel %vm2210_vm13, %v2209_v22, %v2169_v59 }
 0x55d   :  { %v2173_v8 = vpop.permute.xlu0 %2172 }
 0x55e   :  { %v2213_v36 = vsel %vm2212_vm14, %v2211_v25, %v2173_v8 }
 0x55f   :  { %v2185_v38 = vpop.permute.xlu1 %2184  ;;  %v2215_v62 = vsel %vm2214_vm15, %v2213_v36, %v2177_v28 }
 0x561   :  { %v2181_v9 = vpop.permute.xlu0 %2180 }
 0x562   :  { %v2217_v63 = vsel %vm2216_vm0, %v2215_v62, %v2181_v9 }
 0x563   :  { %v2219_v35 = vsel %vm2218_vm1, %v2217_v63, %v2185_v38  ;;  %v2193_v33 = vpop.permute.xlu1 %2192 }
 0x565   :  { %v2189_v14 = vpop.permute.xlu0 %2188 }
 0x566   :  { %v2221_v52 = vsel %vm2220_vm2, %v2219_v35, %v2189_v14 }
 0x567   :  { %v2223_v50 = vsel %vm2222_vm3, %v2221_v52, %v2193_v33 }
 0x568   :  { %2224 = vst [vmem:[#allocation7] sm:$0xff] %v2223_v50 }
 0x569   :  { %3000 = shalt.err (!%p2997_p0)
}
 0x56a   :  { %2234 = dma.vmem_to_hbm [thread:$0]  %s2232_s11, 128, %s3507_s2, [#allocation4]  }
 0x56b   :  { %3013 = dma.done.wait [#allocation4], 128  }
 0x56c   :  { %3014 = vsyncadd [#allocation4], 4294967168 }
 0x56d   :  { %2238 = vsyncpa [#allocation3], 1 }
 0x56e   :  { %2239 = vsyncpa [#allocation6], 1 }
 0x56f   :  { %2240 = vsyncpa [#allocation4], 1 }

</bundles_post_ra>
